<compile_context>
chip_gen: v5e
topology: v5e:2x2
jax: 0.10.0
libtpu: 0.0.40
codegen_flags: <defaults>
</compile_context>

<pallas_src>
import jax
import jax.numpy as jnp
from jax.experimental import pallas as pl
from jax.experimental.pallas import tpu as pltpu


def _attn_kernel(x1_ref, x2_ref, w1_ref, w2_ref, b12_ref, w3b_ref, sel_ref, b3_ref,
                 att_ref, rate_ref):
    # Per grid step (packed layout: each row carries p original pixels, cp = p*C):
    #   x1_ref, x2_ref : (tm, cp)   activations
    #   w1_ref, w2_ref : (cp, cp)   kron(I_p, W^T) block-diagonal 1x1-conv weights
    #   b12_ref        : (1, cp)    b1 + b2, tiled p times
    #   w3b_ref        : (cp, cp)   kron(I_p, w3_col @ 1s): psi broadcast to its C-block
    #   sel_ref        : (cp, p)    picks one representative lane per packed sub-row
    #   b3_ref         : (1, 1)
    #   att_ref        : (tm, cp)   gated x2
    #   rate_ref       : (tm, p)    one rate scalar per original pixel
    x1 = x1_ref[...]
    x2 = x2_ref[...]

    # Two 1x1 convs fused: both dots on the MXU, single combined bias add.
    theta_phi = (jnp.dot(x2, w1_ref[...], preferred_element_type=jnp.float32)
                 + jnp.dot(x1, w2_ref[...], preferred_element_type=jnp.float32)
                 + b12_ref[...])
    f = jnp.maximum(theta_phi, 0.0)                                   # ReLU (VPU)

    # C->1 projection on the MXU; w3b pre-broadcasts psi across each C-block so the
    # gating below is a plain same-shape VPU multiply (no cross-lane broadcast).
    psi = jnp.dot(f, w3b_ref[...], preferred_element_type=jnp.float32) + b3_ref[...]
    rate = 1.0 / (1.0 + jnp.exp(-psi))                                # sigmoid (EUP exp)

    att_ref[...] = (x2 * rate).astype(att_ref.dtype)
    # Extract one rate value per original pixel (lane j*C of each block) on the MXU.
    rate_ref[...] = jnp.dot(rate, sel_ref[...],
                            preferred_element_type=jnp.float32).astype(rate_ref.dtype)


def attention_block_1d_forward(x1, x2, w1, b1, w2, b2, w3, b3, *, block_rows=1024):
    """x1, x2: (N, H, W, C) NHWC (as fed to the PyTorch module).
    w1, w2: (C, C, 1, 1); w3: (1, C, 1, 1); b1, b2: (C,); b3: (1,) (torch Conv2d layout).
    Returns (att_x: (N, H, W, C), rate: (N, 1, H, W))."""
    n, h, w, c = x1.shape
    m = n * h * w
    out_dtype = x2.dtype

    # Lane packing: fold p pixels into the lane dimension when C < 128 so vector
    # loads/stores, the VPU and the MXU all see (near-)full 128-lane rows.
    p = 1
    if c < 128:
        p = max(1, 128 // c)
        while p > 1 and (m % p) != 0:
            p -= 1
    cp = p * c
    mp = m // p

    # Pure metadata reshapes — no HBM copies, no dtype change.
    x1f = x1.reshape(mp, cp)
    x2f = x2.reshape(mp, cp)

    # Torch Conv2d 1x1 weights (out, in, 1, 1) -> (in, out) so the kernel does x @ W,
    # then expanded block-diagonally for the packed layout.
    w1_io = jnp.transpose(w1[:, :, 0, 0]).astype(jnp.float32)          # (C, C)
    w2_io = jnp.transpose(w2[:, :, 0, 0]).astype(jnp.float32)          # (C, C)
    w3_col = jnp.transpose(w3[:, :, 0, 0]).astype(jnp.float32)         # (C, 1)
    eye_p = jnp.eye(p, dtype=jnp.float32)
    ones_c = jnp.ones((1, c), jnp.float32)
    e0 = jnp.zeros((c, 1), jnp.float32).at[0, 0].set(1.0)

    w1_k = jnp.kron(eye_p, w1_io)                                      # (cp, cp)
    w2_k = jnp.kron(eye_p, w2_io)                                      # (cp, cp)
    w3b = jnp.kron(eye_p, w3_col * ones_c)                             # (cp, cp)
    sel = jnp.kron(eye_p, e0)                                          # (cp, p)
    b12 = jnp.tile((b1 + b2).astype(jnp.float32), p).reshape(1, cp)    # (1, cp)
    b3_r = b3.reshape(1, 1).astype(jnp.float32)                        # (1, 1)

    # Row tile: multiples of 8 sublanes; ensure >= 2 grid steps when possible so
    # v7x's two TensorCores both get work ("parallel" grid axis).
    if mp < 8:
        tm = mp                                   # full-dim block (allowed)
    else:
        tm = min(block_rows, mp)
        if tm == mp:                              # single-step grid -> split in two
            tm = (mp + 1) // 2
        tm = max(8, ((tm + 7) // 8) * 8)
    grid = pl.cdiv(mp, tm)

    row_spec = pl.BlockSpec((tm, cp), lambda i: (i, 0))
    rate_spec = pl.BlockSpec((tm, p), lambda i: (i, 0))

    def const_spec(shape):
        return pl.BlockSpec(shape, lambda i: (0,) * len(shape))

    # Explicit VMEM budget (double-buffered activation tiles + resident weights),
    # so larger tiles still compile on v5e's smaller default scoped limit.
    in_bytes = jnp.dtype(x1.dtype).itemsize + jnp.dtype(x2.dtype).itemsize
    out_bytes = jnp.dtype(out_dtype).itemsize
    est = 2 * tm * (cp * (in_bytes + out_bytes) + p * out_bytes)
    est += 2 * 4 * (3 * cp * cp + cp * p + cp + 1)
    est = 2 * est + (2 << 20)
    vmem_limit = int(min(max(est, 32 << 20), 64 << 20))

    att, rate = pl.pallas_call(
        _attn_kernel,
        out_shape=(jax.ShapeDtypeStruct((mp, cp), out_dtype),
                   jax.ShapeDtypeStruct((mp, p), out_dtype)),
        grid_spec=pltpu.PrefetchScalarGridSpec(
            num_scalar_prefetch=0,
            grid=(grid,),
            in_specs=[row_spec, row_spec,
                      const_spec((cp, cp)), const_spec((cp, cp)),
                      const_spec((1, cp)),
                      const_spec((cp, cp)), const_spec((cp, p)),
                      const_spec((1, 1))],
            out_specs=[row_spec, rate_spec],
        ),
        compiler_params=pltpu.CompilerParams(
            dimension_semantics=("parallel",),
            vmem_limit_bytes=vmem_limit),
    )(x1f, x2f, w1_k, w2_k, b12, w3b, sel, b3_r)

    # Pure reshapes back to the module's output layouts.
    att_x = att.reshape(n, h, w, c)
    rate_nchw = rate.reshape(n, 1, h, w)
    return att_x, rate_nchw


def reference_forward(x1, x2, w1, b1, w2, b2, w3, b3):
    """Pure-JAX mirror of the PyTorch module (x1, x2 given as NHWC)."""
    hi = "highest"
    theta = jnp.einsum("nhwc,oc->nhwo", x2, w1[:, :, 0, 0], precision=hi) + b1
    phi = jnp.einsum("nhwc,oc->nhwo", x1, w2[:, :, 0, 0], precision=hi) + b2
    f = jnp.maximum(theta + phi, 0.0)
    psi = jnp.einsum("nhwc,oc->nhwo", f, w3[:, :, 0, 0], precision=hi) + b3
    rate = jax.nn.sigmoid(psi)                        # (N, H, W, 1)
    att = x2 * rate                                   # NHWC
    return att, jnp.transpose(rate, (0, 3, 1, 2))     # rate as (N, 1, H, W)


if __name__ == "__main__":
    # Small shapes consistent with the module: batch=2, H=16, W=32, inter_channel=32.
    N, H, W, C = 2, 16, 32, 32

    key = jax.random.PRNGKey(0)
    k1, k2, kw1, kb1, kw2, kb2, kw3, kb3 = jax.random.split(key, 8)

    x1 = jax.random.normal(k1, (N, H, W, C), dtype=jnp.float32)
    x2 = jax.random.normal(k2, (N, H, W, C), dtype=jnp.float32)
    # Conv2d weight layout: (out_channels, in_channels, 1, 1)
    w1 = 0.2 * jax.random.normal(kw1, (C, C, 1, 1), dtype=jnp.float32)
    b1 = 0.1 * jax.random.normal(kb1, (C,), dtype=jnp.float32)
    w2 = 0.2 * jax.random.normal(kw2, (C, C, 1, 1), dtype=jnp.float32)
    b2 = 0.1 * jax.random.normal(kb2, (C,), dtype=jnp.float32)
    w3 = 0.2 * jax.random.normal(kw3, (1, C, 1, 1), dtype=jnp.float32)
    b3 = 0.1 * jax.random.normal(kb3, (1,), dtype=jnp.float32)

    att_x, rate = attention_block_1d_forward(x1, x2, w1, b1, w2, b2, w3, b3)
    att_x = jax.block_until_ready(att_x)
    rate = jax.block_until_ready(rate)

    att_ref, rate_ref = reference_forward(x1, x2, w1, b1, w2, b2, w3, b3)

    assert att_x.shape == (N, H, W, C), att_x.shape
    assert rate.shape == (N, 1, H, W), rate.shape
    err_att = float(jnp.max(jnp.abs(att_x - att_ref)))
    err_rate = float(jnp.max(jnp.abs(rate - rate_ref)))
    assert err_att < 2e-4, err_att
    assert err_rate < 2e-4, err_rate

    print("KERNEL_OK")
</pallas_src>

<mosaic_0001>
module attributes {stable_mosaic.version = 11 : i64} {
  func.func @_attn_kernel(%arg0: i32, %arg1: memref<128x128xf32, #tpu.memory_space<vmem>>, %arg2: memref<128x128xf32, #tpu.memory_space<vmem>>, %arg3: memref<128x128xf32, #tpu.memory_space<vmem>>, %arg4: memref<128x128xf32, #tpu.memory_space<vmem>>, %arg5: memref<1x128xf32, #tpu.memory_space<vmem>>, %arg6: memref<128x128xf32, #tpu.memory_space<vmem>>, %arg7: memref<128x4xf32, #tpu.memory_space<vmem>>, %arg8: memref<1x1xf32, #tpu.memory_space<vmem>>, %arg9: memref<128x128xf32, #tpu.memory_space<vmem>>, %arg10: memref<128x4xf32, #tpu.memory_space<vmem>>) attributes {dimension_semantics = [#tpu.dimension_semantics<parallel>], iteration_bounds = array<i64: 2>, scalar_prefetch = 0 : i64, scratch_operands = 0 : i64, tpu.core_type = #tpu.core_type<tc>, window_params = [{transform_indices = @transform_0, window_bounds = array<i64: 128, 128>}, {transform_indices = @transform_1, window_bounds = array<i64: 128, 128>}, {pipeline_mode = #tpu.pipeline_mode<synchronous>, transform_indices = @transform_2, window_bounds = array<i64: 128, 128>}, {pipeline_mode = #tpu.pipeline_mode<synchronous>, transform_indices = @transform_3, window_bounds = array<i64: 128, 128>}, {pipeline_mode = #tpu.pipeline_mode<synchronous>, transform_indices = @transform_4, window_bounds = array<i64: 1, 128>}, {pipeline_mode = #tpu.pipeline_mode<synchronous>, transform_indices = @transform_5, window_bounds = array<i64: 128, 128>}, {pipeline_mode = #tpu.pipeline_mode<synchronous>, transform_indices = @transform_6, window_bounds = array<i64: 128, 4>}, {pipeline_mode = #tpu.pipeline_mode<synchronous>, transform_indices = @transform_7, window_bounds = array<i64: 1, 1>}, {transform_indices = @transform_8, window_bounds = array<i64: 128, 128>}, {transform_indices = @transform_9, window_bounds = array<i64: 128, 4>}]} {
    %c0 = arith.constant 0 : index
    %c0_0 = arith.constant 0 : index
    %0 = vector.load %arg1[%c0, %c0_0] : memref<128x128xf32, #tpu.memory_space<vmem>>, vector<128x128xf32>
    %c0_1 = arith.constant 0 : index
    %c0_2 = arith.constant 0 : index
    %1 = vector.load %arg2[%c0_1, %c0_2] : memref<128x128xf32, #tpu.memory_space<vmem>>, vector<128x128xf32>
    %c0_3 = arith.constant 0 : index
    %c0_4 = arith.constant 0 : index
    %2 = vector.load %arg3[%c0_3, %c0_4] : memref<128x128xf32, #tpu.memory_space<vmem>>, vector<128x128xf32>
    %cst = arith.constant dense<0.000000e+00> : vector<128x128xf32>
    %3 = tpu.matmul %1, %2, %cst {dimension_numbers = #tpu.dot_dimension_numbers<[1], [0], [0], [1], [0, 0, 1, 1], [], []>} : vector<128x128xf32>, vector<128x128xf32>, vector<128x128xf32> -> vector<128x128xf32>
    %c0_5 = arith.constant 0 : index
    %c0_6 = arith.constant 0 : index
    %4 = vector.load %arg4[%c0_5, %c0_6] : memref<128x128xf32, #tpu.memory_space<vmem>>, vector<128x128xf32>
    %cst_7 = arith.constant dense<0.000000e+00> : vector<128x128xf32>
    %5 = tpu.matmul %0, %4, %cst_7 {dimension_numbers = #tpu.dot_dimension_numbers<[1], [0], [0], [1], [0, 0, 1, 1], [], []>} : vector<128x128xf32>, vector<128x128xf32>, vector<128x128xf32> -> vector<128x128xf32>
    %6 = arith.addf %3, %5 : vector<128x128xf32>
    %c0_8 = arith.constant 0 : index
    %c0_9 = arith.constant 0 : index
    %7 = vector.load %arg5[%c0_8, %c0_9] : memref<1x128xf32, #tpu.memory_space<vmem>>, vector<1x128xf32>
    %8 = vector.broadcast %7 : vector<1x128xf32> to vector<128x128xf32>
    %9 = arith.addf %6, %8 : vector<128x128xf32>
    %cst_10 = arith.constant 0.000000e+00 : f32
    %10 = vector.broadcast %cst_10 : f32 to vector<128x128xf32>
    %11 = arith.maximumf %9, %10 : vector<128x128xf32>
    %c0_11 = arith.constant 0 : index
    %c0_12 = arith.constant 0 : index
    %12 = vector.load %arg6[%c0_11, %c0_12] : memref<128x128xf32, #tpu.memory_space<vmem>>, vector<128x128xf32>
    %cst_13 = arith.constant dense<0.000000e+00> : vector<128x128xf32>
    %13 = tpu.matmul %11, %12, %cst_13 {dimension_numbers = #tpu.dot_dimension_numbers<[1], [0], [0], [1], [0, 0, 1, 1], [], []>} : vector<128x128xf32>, vector<128x128xf32>, vector<128x128xf32> -> vector<128x128xf32>
    %c0_14 = arith.constant 0 : index
    %c0_15 = arith.constant 0 : index
    %14 = vector.load %arg8[%c0_14, %c0_15] : memref<1x1xf32, #tpu.memory_space<vmem>>, vector<1x1xf32>
    %15 = vector.broadcast %14 : vector<1x1xf32> to vector<128x128xf32>
    %16 = arith.addf %13, %15 : vector<128x128xf32>
    %cst_16 = arith.constant 0.000000e+00 : f32
    %17 = vector.broadcast %cst_16 : f32 to vector<128x128xf32>
    %18 = arith.subf %17, %16 : vector<128x128xf32>
    %19 = math.exp %18 : vector<128x128xf32>
    %cst_17 = arith.constant 1.000000e+00 : f32
    %20 = vector.broadcast %cst_17 : f32 to vector<128x128xf32>
    %21 = arith.addf %20, %19 : vector<128x128xf32>
    %cst_18 = arith.constant 1.000000e+00 : f32
    %22 = vector.broadcast %cst_18 : f32 to vector<128x128xf32>
    %23 = arith.divf %22, %21 : vector<128x128xf32>
    %24 = arith.mulf %1, %23 : vector<128x128xf32>
    %c0_19 = arith.constant 0 : index
    %c0_20 = arith.constant 0 : index
    %25 = vector.load %arg9[%c0_19, %c0_20] : memref<128x128xf32, #tpu.memory_space<vmem>>, vector<128x128xf32>
    tpu.vector_store %arg9[%c0_19, %c0_20], %24 {strides = array<i32>} : memref<128x128xf32, #tpu.memory_space<vmem>>, vector<128x128xf32>,
    %c0_21 = arith.constant 0 : index
    %c0_22 = arith.constant 0 : index
    %26 = vector.load %arg7[%c0_21, %c0_22] : memref<128x4xf32, #tpu.memory_space<vmem>>, vector<128x4xf32>
    %cst_23 = arith.constant dense<0.000000e+00> : vector<128x4xf32>
    %27 = tpu.matmul %23, %26, %cst_23 {dimension_numbers = #tpu.dot_dimension_numbers<[1], [0], [0], [1], [0, 0, 1, 1], [], []>} : vector<128x128xf32>, vector<128x4xf32>, vector<128x4xf32> -> vector<128x4xf32>
    %c0_24 = arith.constant 0 : index
    %c0_25 = arith.constant 0 : index
    %28 = vector.load %arg10[%c0_24, %c0_25] : memref<128x4xf32, #tpu.memory_space<vmem>>, vector<128x4xf32>
    tpu.vector_store %arg10[%c0_24, %c0_25], %27 {strides = array<i32>} : memref<128x4xf32, #tpu.memory_space<vmem>>, vector<128x4xf32>,
    return
  }
  func.func @transform_0(%arg0: i32) -> (i32, i32) {
    %c0_i32 = arith.constant 0 : i32
    %c0_i32_0 = arith.constant 0 : i32
    return %arg0, %c0_i32 : i32, i32
  }
  func.func @transform_1(%arg0: i32) -> (i32, i32) {
    %c0_i32 = arith.constant 0 : i32
    %c0_i32_0 = arith.constant 0 : i32
    return %arg0, %c0_i32 : i32, i32
  }
  func.func @transform_2(%arg0: i32) -> (i32, i32) {
    %c0_i32 = arith.constant 0 : i32
    %c0_i32_0 = arith.constant 0 : i32
    %c0_i32_1 = arith.constant 0 : i32
    return %c0_i32, %c0_i32_0 : i32, i32
  }
  func.func @transform_3(%arg0: i32) -> (i32, i32) {
    %c0_i32 = arith.constant 0 : i32
    %c0_i32_0 = arith.constant 0 : i32
    %c0_i32_1 = arith.constant 0 : i32
    return %c0_i32, %c0_i32_0 : i32, i32
  }
  func.func @transform_4(%arg0: i32) -> (i32, i32) {
    %c0_i32 = arith.constant 0 : i32
    %c0_i32_0 = arith.constant 0 : i32
    %c0_i32_1 = arith.constant 0 : i32
    return %c0_i32, %c0_i32_0 : i32, i32
  }
  func.func @transform_5(%arg0: i32) -> (i32, i32) {
    %c0_i32 = arith.constant 0 : i32
    %c0_i32_0 = arith.constant 0 : i32
    %c0_i32_1 = arith.constant 0 : i32
    return %c0_i32, %c0_i32_0 : i32, i32
  }
  func.func @transform_6(%arg0: i32) -> (i32, i32) {
    %c0_i32 = arith.constant 0 : i32
    %c0_i32_0 = arith.constant 0 : i32
    %c0_i32_1 = arith.constant 0 : i32
    return %c0_i32, %c0_i32_0 : i32, i32
  }
  func.func @transform_7(%arg0: i32) -> (i32, i32) {
    %c0_i32 = arith.constant 0 : i32
    %c0_i32_0 = arith.constant 0 : i32
    %c0_i32_1 = arith.constant 0 : i32
    return %c0_i32, %c0_i32_0 : i32, i32
  }
  func.func @transform_8(%arg0: i32) -> (i32, i32) {
    %c0_i32 = arith.constant 0 : i32
    %c0_i32_0 = arith.constant 0 : i32
    return %arg0, %c0_i32 : i32, i32
  }
  func.func @transform_9(%arg0: i32) -> (i32, i32) {
    %c0_i32 = arith.constant 0 : i32
    %c0_i32_0 = arith.constant 0 : i32
    return %arg0, %c0_i32 : i32, i32
  }
}

</mosaic_0001>

<bundles_post_ra>
// kernel: tpu_custom_call.1
= control target key start
LH: loop header
LB: loop body
LE: loop exit
PB: predicated region body
PF: predicated region fallthrough
CT: control target
= control target key end

     0   :  { %s2275_s0 = inlined_call_operand.hbm [shape: f32[256,128], index: 0, kind: input, shape index: {}]   ;;  %s2276_s1 = inlined_call_operand.hbm [shape: f32[256,128], index: 1, kind: input, shape index: {}]   ;;  %s2277_s2 = inlined_call_operand.vmem [shape: f32[128,128], index: 2, kind: input, shape index: {}]   ;;  %s2278_s3 = inlined_call_operand.hbm [shape: f32[128,128], index: 3, kind: input, shape index: {}]   ;;  %s2279_s4 = inlined_call_operand.vmem [shape: f32[1,128], index: 4, kind: input, shape index: {}]   ;;  %s2280_s5 = inlined_call_operand.hbm [shape: f32[128,128], index: 5, kind: input, shape index: {}]   ;;  %s2281_s6 = inlined_call_operand.vmem [shape: f32[128,4], index: 6, kind: input, shape index: {}]   ;;  %s2282_s7 = inlined_call_operand.<no memory space> [shape: f32[1,1], index: 7, kind: input, shape index: {}]   ;;  %s2283_s8 = inlined_call_operand.hbm [shape: f32[256,128], index: 8, kind: output, shape index: {0}]   ;;  %s2284_s9 = inlined_call_operand.vmem [shape: f32[256,4], index: 9, kind: output, shape index: {1}]  }
   0x1   :  { %2293 = sst [smem:[#allocation21_spill]] %s2275_s0  ;;  %v15_v0 = vstv %s2282_s7 }
   0x2   :  { %2294 = sst [smem:[#allocation22_spill]] %s2278_s3  ;;  %16 = vst [vmem:[#allocation2] sm:$0x1] %v15_v0 }
   0x3   :  { %2295 = sst [smem:[#allocation23_spill]] %s2280_s5 }
   0x4   :  { %17 = vsyncpa [#allocation4], 0 }
   0x5   :  { %19 = vsyncpa [#allocation4 + $0x1], 0 }
   0x6   :  { %20 = vsyncpa [#allocation7], 0 }
   0x7   :  { %22 = vsyncpa [#allocation7 + $0x1], 0 }
   0x8   :  { %23 = vsyncpa [#allocation10], 0 }
   0x9   :  { %24 = vsyncpa [#allocation5], 0 }
   0xa   :  { %26 = vsyncpa [#allocation5 + $0x1], 0  ;;  %s1797_s11 = smov 0   ;;  %s1799_s12 = smov 0  }
   0xb   :  { %s1801_s13 = smov 0   ;;  %s1803_s14 = smov 0  }
   0xc LB: > { %2296 = sst [smem:[#allocation17_spill]] %s1731_s13  ;;  %s1818_s7 = sadd.s32 4294967295, %s1735_s14   ;;  %s1735_s14 = sphi %s1803_s14, %s2312_s14   ;;  %s1731_s13 = sphi %s1801_s13, %s2314_s13   ;;  %s1727_s12 = sphi %s1799_s12, %s2316_s12   ;;  %s1723_s11 = sphi %s1797_s11, %s2315_s11  }
   0xd   : > { %s1364_s15 = sadd.s32 4294967294, %s1735_s14   ;;  %p52_p0 = scmp.ne.s32.totalorder %s1727_s12, %s1723_s11 }
   0xe   : > { %p53_p1 = scmp.eq.s32.totalorder %s1818_s7, 0  ;;  %p228_p2 = scmp.eq.s32.totalorder %s1818_s7, 1 }
   0xf   : > { %p234_p3 = scmp.eq.s32.totalorder %s1364_s15, 1  ;;  %p1365_p5 = scmp.ge.s32.totalorder %s1735_s14, 1 }
  0x10   : > { %p1827_p4 = por %p53_p1, %p52_p0  ;;  %p267_p7 = scmp.lt.s32.totalorder %s1735_s14, 3 }
  0x11   : > { %p1832_p6 = por %p234_p3, %p52_p0  ;;  %s2300_s3 = sld [smem:[#allocation22_spill]] }
  0x12   : > { %p1840_p8 = pnand %p1365_p5, %p267_p7  ;;  %s1737_s22 = smov [#allocation8]  }
  0x13   : > { %s2298_s17 = scalar_select %p1832_p6, 1, 0 }
  0x14   : > { %p1405_p9 = pneg %p1840_p8  ;;  %s283_s23 = sshll.u32 %s1737_s22, 4  ;;  %s284_s23 = int_to_ptr.vmem [resolvable:$true] %s283_s23 }
  0x15   : > { %2299 = sst [smem:[#allocation18_spill]] %s2298_s17  ;;  %s2285_s27 = smov 128  }
  0x16   : > { %p1406_p10 = pnand %p1405_p9, %p53_p1  ;;  %s2302_s5 = sld [smem:[#allocation23_spill]] }
  0x17   : > { %s281_s20 = sshll.u32 %s2300_s3, 4  ;;  %s2287_s28 = smov 8   ;;  %s282_s20 = int_to_ptr.hbm [resolvable:$true] %s281_s20 }
  0x18   : > { %1408 = dma.hbm_to_vmem [thread:$0]  (!%p1406_p10), %s282_s20, 2048, %s284_s23, [#allocation7], %s2285_s27, %s2285_s27, %s2287_s28  }
  0x19   : > { %s1740_s29 = smov [#allocation9]   ;;  %s1859_s10 = sadd.s32 1, %s1735_s14  }
  0x1a   : > { %s300_s30 = sshll.u32 %s1740_s29, 4  ;;  %2303 = sst [smem:[#allocation19_spill]] %s1859_s10  ;;  %s301_s30 = int_to_ptr.vmem [resolvable:$true] %s300_s30 }
  0x1b   : > { %s39_s15 = sadd.s32 1, %s1731_s13  ;;  %s36_s18 = ssub.s32 %s1735_s14, %s1859_s10 }
  0x1c   : > { %s298_s26 = sshll.u32 %s2302_s5, 4  ;;  %p46_p12 = scmp.ne.s32.totalorder %s1731_s13, %s1727_s12  ;;  %s299_s26 = int_to_ptr.hbm [resolvable:$true] %s298_s26 }
  0x1d   : > { %1411 = dma.hbm_to_vmem [thread:$0]  (!%p1406_p10), %s299_s26, 2048, %s301_s30, [#allocation10], %s2285_s27, %s2285_s27, %s2287_s28  }
  0x1e   : > { %p37_p13 = scmp.eq.s32.totalorder %s36_s18, 0  ;;  %p47_p0 = scmp.eq.s32.totalorder %s1735_s14, 0 }
  0x1f   : > { %p1869_p3 = por %p228_p2, %p46_p12  ;;  %p1425_p5 = scmp.lt.s32.totalorder %s1735_s14, 2 }
  0x20   : > { %s1875_s20 = scalar_select %p37_p13, %s1731_s13, %s39_s15  }
  0x21   : > { %p48_p7 = por %p47_p0, %p46_p12  ;;  %s320_s22 = sand.u32 1, %s1731_s13  }
  0x22   : > { %2305 = sst [smem:[#allocation20_spill]] %s1875_s20  ;;  %s1878_s23 = sshll.u32 %s320_s22, 7 }
  0x23   : > { %s1388_s24 = sshll.u32 %s1735_s14, 7  ;;  %s2306_s0 = sld [smem:[#allocation21_spill]] }
  0x24   : > { %s324_s30 = scalar_lea.vmem [#allocation3], %s1878_s23  ;;  %p1885_p2 = pnand %p1425_p5, %p48_p7 }
  0x25   : > { %s332_s18 = sshll.u32 %s324_s30, 4  ;;  %s351_s5 = scalar_lea.hbm %s2276_s1, %s1388_s24  ;;  %s333_s18 = int_to_ptr.vmem [resolvable:$true] %s332_s18 }
  0x26   : > { %s352_s20 = sshll.u32 %s351_s5, 4  ;;  %s321_s13 = scalar_lea.sflag [#allocation4], %s320_s22  ;;  %s353_s20 = int_to_ptr.hbm [resolvable:$true] %s352_s20 }
  0x27   : > { %p1601_p10 = pneg %p1885_p2 }
  0x29   : > { %s329_s29 = scalar_lea.hbm %s2306_s0, %s1388_s24  ;;  %s1604_s30 = scalar_lea.hbm %s2306_s0, 256 }
  0x2a   : > { %s330_s27 = sshll.u32 %s329_s29, 4  ;;  %s331_s27 = int_to_ptr.hbm [resolvable:$true] %s330_s27 }
  0x2b   : > { %s1597_s10 = sshra.s32 %s331_s27, 4  ;;  %s1598_s10 = int_to_ptr.hbm [resolvable:$true] %s1597_s10 }
  0x2c   : > { %s1599_s25 = scalar_lea.hbm %s1598_s10, 128  ;;  %p1605_p0 = scmp.lt.s32.totalorder %s1598_s10, %s2306_s0 }
  0x2d   : > { %p1600_p9 = scmp.ne.s32.totalorder %s1598_s10, %s1599_s25  ;;  %p1606_p5 = scmp.lt.s32.totalorder %s1604_s30, %s1599_s25 }
  0x2f   : > { %p1602_p12 = pnand %p1601_p10, %p1600_p9  ;;  %p1607_p7 = por %p1606_p5, %p1605_p0 }
  0x31   : > { %p1603_p13 = pneg %p1602_p12 }
  0x33   : > { %p1608_p11 = pnand %p1607_p7, %p1603_p13 }
  0x35   : > { %1611 = shalt.err (!%p1608_p11)
}
  0x36   : > { %s2308_s5 = smov 8   ;;  %s2309_s22 = smov 128  }
  0x37   : > { %1415 = dma.hbm_to_vmem [thread:$0]  (!%p1885_p2), %s331_s27, 2048, %s333_s18, %s321_s13, %s2309_s22, %s2309_s22, %s2308_s5  }
  0x38   : > { %s346_s24 = scalar_lea.vmem [#allocation6], %s1878_s23  ;;  %s342_s29 = sand.u32 1, %s1735_s14  }
  0x39   : > { %s354_s26 = sshll.u32 %s346_s24, 4  ;;  %s343_s3 = scalar_lea.sflag [#allocation7], %s342_s29  ;;  %s355_s26 = int_to_ptr.vmem [resolvable:$true] %s354_s26 }
  0x3a   : > { %s1627_s10 = sshra.s32 %s353_s20, 4  ;;  %s1634_s0 = scalar_lea.hbm %s2276_s1, 256  ;;  %s1628_s10 = int_to_ptr.hbm [resolvable:$true] %s1627_s10 }
  0x3b   : > { %s1629_s25 = scalar_lea.hbm %s1628_s10, 128  ;;  %p1635_p13 = scmp.lt.s32.totalorder %s1628_s10, %s2276_s1 }
  0x3c   : > { %p1630_p9 = scmp.ne.s32.totalorder %s1628_s10, %s1629_s25  ;;  %p1636_p0 = scmp.lt.s32.totalorder %s1634_s0, %s1629_s25 }
  0x3e   : > { %p1632_p11 = pnand %p1630_p9, %p1601_p10  ;;  %p1637_p5 = por %p1636_p0, %p1635_p13 }
  0x40   : > { %p1633_p12 = pneg %p1632_p11 }
  0x42   : > { %p1638_p7 = pnand %p1637_p5, %p1633_p12 }
  0x44   : > { %1641 = shalt.err (!%p1638_p7)
}
  0x45   : > { %1418 = dma.hbm_to_vmem [thread:$0]  (!%p1885_p2), %s353_s20, 2048, %s355_s26, %s343_s3, %s2309_s22, %s2309_s22, %s2308_s5  }
  0x46   : > { %366 = sbr.rel (%p1840_p8) target bundleno = 665 (0x299), region = 52  ;;  %s1927_s27 = sand.u32 (!%p1840_p8), 1, %s1727_s12  }
  0x47   : > { %s1930_s17 = sshll.u32 (!%p1840_p8), %s1927_s27, 7  ;;  %s369_s0 = scalar_lea.sflag (!%p1840_p8), [#allocation4], %s1927_s27 }
  0x48   : > { %s1934_s23 = scalar_lea.vmem (!%p1840_p8), [#allocation3], %s1930_s17 }
  0x4b   : > { %1702 = dma.done.wait (%p1827_p4), %s369_s0, 2048  }
  0x4c   : > { %1704 = vsyncadd (%p1827_p4), %s369_s0, 4294965248  ;;  %s378_s21 = sand.u32 1, %s1818_s7   ;;  %s1942_s20 = scalar_lea.vmem [#allocation6], %s1930_s17 }
  0x4d   : > { %s379_s28 = scalar_lea.sflag [#allocation7], %s378_s21 }
  0x4e   : > { %1706 = dma.done.wait (%p1827_p4), %s379_s28, 2048  }
  0x4f   : > { %1708 = vsyncadd (%p1827_p4), %s379_s28, 4294965248 }
  0x50   : > { %1710 = dma.done.wait (%p53_p1), [#allocation7], 2048  }
  0x51   : > { %1712 = vsyncadd (%p53_p1), [#allocation7], 4294965248 }
  0x52   : > { %1714 = dma.done.wait (%p53_p1), [#allocation10], 2048  }
  0x53   : > { %1716 = vsyncadd (%p53_p1), [#allocation10], 4294965248  ;;  %v510_v1 = vld [vmem:[#allocation8 + $0x78] sm:$0xff]  ;;  %v509_v3 = vld [vmem:[#allocation8 + $0x70] sm:$0xff]  ;;  %s2156_s18 = scalar_lea.vmem [#allocation11], %s1930_s17  ;;  %s1381_s17 = sshll.u32 %s1818_s7, 4 }
  0x54   : > { %v494_v2 = vld [vmem:[%s2277_s2 + $0x78] sm:$0xff]  ;;  %511 = vmatpush.msra.mxu0 %v510_v1  ;;  %v493_v4 = vld [vmem:[%s2277_s2 + $0x70] sm:$0xff]  ;;  %v492_v6 = vld [vmem:[%s2277_s2 + $0x68] sm:$0xff]  ;;  %p442_p1 = scmp.lt.s32.totalorder %s1381_s17, 31  ;;  %s1390_s5 = sshll.u32 %s1818_s7, 7 }
  0x55   : > { %576 = vmatpush.msra.mxu1 %v494_v2  ;;  %v508_v5 = vld [vmem:[#allocation8 + $0x68] sm:$0xff]  ;;  %v507_v7 = vld [vmem:[#allocation8 + $0x60] sm:$0xff]  ;;  %v506_v9 = vld [vmem:[#allocation8 + $0x58] sm:$0xff]  ;;  %s1216_s22 = scalar_lea.hbm %s2283_s8, %s1390_s5  ;;  %s1217_s24 = sshll.u32 %s2156_s18, 4  ;;  %s1218_s24 = int_to_ptr.vmem [resolvable:$true] %s1217_s24 }
  0x56   : > { %512 = vmatpush.msra.mxu0 %v509_v3  ;;  %v491_v8 = vld [vmem:[%s2277_s2 + $0x60] sm:$0xff]  ;;  %v490_v10 = vld [vmem:[%s2277_s2 + $0x58] sm:$0xff]  ;;  %v489_v12 = vld [vmem:[%s2277_s2 + $0x50] sm:$0xff]  ;;  %s2318_s17 = smov (!%p442_p1, %s1381_s17), 31  ;;  %s1219_s26 = sshll.u32 %s1216_s22, 4  ;;  %s1220_s26 = int_to_ptr.hbm [resolvable:$true] %s1219_s26 }
  0x57   : > { %577 = vmatpush.msra.mxu1 %v493_v4  ;;  %v505_v11 = vld [vmem:[#allocation8 + $0x50] sm:$0xff]  ;;  %v504_v13 = vld [vmem:[#allocation8 + $0x48] sm:$0xff]  ;;  %v503_v15 = vld [vmem:[#allocation8 + $0x40] sm:$0xff]  ;;  %s1382_s29 = sshll.u32 %s2318_s17, 3  ;;  %s1200_s3 = scalar_lea.sflag [#allocation5], %s1927_s27 }
  0x58   : > { %513 = vmatpush.msra.mxu0 %v508_v5  ;;  %v488_v14 = vld [vmem:[%s2277_s2 + $0x48] sm:$0xff]  ;;  %v487_v16 = vld [vmem:[%s2277_s2 + $0x40] sm:$0xff]  ;;  %v486_v18 = vld [vmem:[%s2277_s2 + $0x38] sm:$0xff]  ;;  %s1671_s10 = sshra.s32 %s1220_s26, 4  ;;  %s1677_s30 = scalar_lea.hbm %s2283_s8, 256  ;;  %s1672_s10 = int_to_ptr.hbm [resolvable:$true] %s1671_s10 }
  0x59   : > { %578 = vmatpush.msra.mxu1 %v492_v6  ;;  %v502_v17 = vld [vmem:[#allocation8 + $0x38] sm:$0xff]  ;;  %v501_v19 = vld [vmem:[#allocation8 + $0x30] sm:$0xff]  ;;  %v500_v21 = vld [vmem:[#allocation8 + $0x28] sm:$0xff]  ;;  %p1678_p10 = scmp.lt.s32.totalorder %s1672_s10, %s2283_s8 }
  0x5a   : > { %514 = vmatpush.msra.mxu0 %v507_v7  ;;  %v485_v20 = vld [vmem:[%s2277_s2 + $0x30] sm:$0xff]  ;;  %v484_v22 = vld [vmem:[%s2277_s2 + $0x28] sm:$0xff]  ;;  %v483_v24 = vld [vmem:[%s2277_s2 + $0x20] sm:$0xff] }
  0x5b   : > { %579 = vmatpush.msra.mxu1 %v491_v8  ;;  %v499_v23 = vld [vmem:[#allocation8 + $0x20] sm:$0xff]  ;;  %v498_v25 = vld [vmem:[#allocation8 + $0x18] sm:$0xff]  ;;  %v497_v27 = vld [vmem:[#allocation8 + $0x10] sm:$0xff] }
  0x5c   : > { %515 = vmatpush.msra.mxu0 %v506_v9  ;;  %v482_v26 = vld [vmem:[%s2277_s2 + $0x18] sm:$0xff]  ;;  %v481_v28 = vld [vmem:[%s2277_s2 + $0x10] sm:$0xff]  ;;  %v480_v30 = vld [vmem:[%s2277_s2 + $0x8] sm:$0xff] }
  0x5d   : > { %580 = vmatpush.msra.mxu1 %v490_v10  ;;  %v496_v29 = vld [vmem:[#allocation8 + $0x8] sm:$0xff]  ;;  %v495_v31 = vld [vmem:[#allocation8] sm:$0xff]  ;;  %v449_v37 = vld [vmem:[%s1934_s23 + $0x10] sm:$0xff] }
  0x5e   : > { %516 = vmatpush.msra.mxu0 %v505_v11  ;;  %v479_v32 = vld [vmem:[%s2277_s2] sm:$0xff]  ;;  %v448_v35 = vld [vmem:[%s1934_s23 + $0x8] sm:$0xff]  ;;  %v2016_v38 = vld [vmem:[%s1942_s20 + $0x10] sm:$0xff] }
  0x5f   : > { %581 = vmatpush.msra.mxu1 %v489_v12  ;;  %v447_v33 = vld [vmem:[%s1934_s23] sm:$0xff]  ;;  %v2011_v36 = vld [vmem:[%s1942_s20 + $0x8] sm:$0xff]  ;;  %v450_v39 = vld [vmem:[%s1934_s23 + $0x18] sm:$0xff] }
  0x60   : > { %517 = vmatpush.msra.mxu0 %v504_v13  ;;  %v2006_v34 = vld [vmem:[%s1942_s20] sm:$0xff]  ;;  %v2021_v40 = vld [vmem:[%s1942_s20 + $0x18] sm:$0xff]  ;;  %v452_v43 = vld [vmem:[%s1934_s23 + $0x28] sm:$0xff] }
  0x61   : > { %582 = vmatpush.msra.mxu1 %v488_v14  ;;  %v451_v41 = vld [vmem:[%s1934_s23 + $0x20] sm:$0xff]  ;;  %v2031_v44 = vld [vmem:[%s1942_s20 + $0x28] sm:$0xff]  ;;  %v453_v45 = vld [vmem:[%s1934_s23 + $0x30] sm:$0xff] }
  0x62   : > { %518 = vmatpush.msra.mxu0 %v503_v15  ;;  %v2026_v42 = vld [vmem:[%s1942_s20 + $0x20] sm:$0xff]  ;;  %v2036_v46 = vld [vmem:[%s1942_s20 + $0x30] sm:$0xff]  ;;  %v454_v47 = vld [vmem:[%s1934_s23 + $0x38] sm:$0xff]  ;;  %v1741_v15 = vmov 0  }
  0x63   : > { %583 = vmatpush.msra.mxu1 %v487_v16  ;;  %v2041_v48 = vld [vmem:[%s1942_s20 + $0x38] sm:$0xff]  ;;  %v455_v49 = vld [vmem:[%s1934_s23 + $0x40] sm:$0xff]  ;;  %v691_v52 = vld [vmem:[#allocation9 + $0x70] sm:$0xff]  ;;  %1468 = vset.pattern.permute.xlu0 %v1741_v15 }
  0x64   : > { %519 = vmatpush.msra.mxu0 %v502_v17  ;;  %v2046_v50 = vld [vmem:[%s1942_s20 + $0x40] sm:$0xff]  ;;  %v692_v51 = vld [vmem:[#allocation9 + $0x78] sm:$0xff]  ;;  %v456_v53 = vld [vmem:[%s1934_s23 + $0x48] sm:$0xff] }
  0x65   : > { %584 = vmatpush.msra.mxu1 %v486_v18  ;;  %700 = vmatpush.msra.mxu2 %v692_v51  ;;  %v2051_v54 = vld [vmem:[%s1942_s20 + $0x48] sm:$0xff]  ;;  %v689_v56 = vld [vmem:[#allocation9 + $0x60] sm:$0xff]  ;;  %v688_v57 = vld [vmem:[#allocation9 + $0x58] sm:$0xff] }
  0x66   : > { %520 = vmatpush.msra.mxu0 %v501_v19  ;;  %v690_v55 = vld [vmem:[#allocation9 + $0x68] sm:$0xff]  ;;  %v687_v58 = vld [vmem:[#allocation9 + $0x50] sm:$0xff]  ;;  %v685_v62 = vld [vmem:[#allocation9 + $0x40] sm:$0xff] }
  0x67   : > { %585 = vmatpush.msra.mxu1 %v485_v20  ;;  %701 = vmatpush.msra.mxu2 %v691_v52  ;;  %v457_v59 = vld [vmem:[%s1934_s23 + $0x50] sm:$0xff]  ;;  %v686_v61 = vld [vmem:[#allocation9 + $0x48] sm:$0xff]  ;;  %v684_v63 = vld [vmem:[#allocation9 + $0x38] sm:$0xff] }
  0x68   : > { %521 = vmatpush.msra.mxu0 %v500_v21  ;;  %v2056_v60 = vld [vmem:[%s1942_s20 + $0x50] sm:$0xff]  ;;  %v458_v1 = vld [vmem:[%s1934_s23 + $0x58] sm:$0xff]  ;;  %v682_v3 = vld [vmem:[#allocation9 + $0x28] sm:$0xff] }
  0x69   : > { %586 = vmatpush.msra.mxu1 %v484_v22  ;;  %702 = vmatpush.msra.mxu2 %v690_v55  ;;  %v683_v0 = vld [vmem:[#allocation9 + $0x30] sm:$0xff]  ;;  %v2061_v2 = vld [vmem:[%s1942_s20 + $0x58] sm:$0xff]  ;;  %v681_v4 = vld [vmem:[#allocation9 + $0x20] sm:$0xff] }
  0x6a   : > { %522 = vmatpush.msra.mxu0 %v499_v23  ;;  %v680_v5 = vld [vmem:[#allocation9 + $0x18] sm:$0xff]  ;;  %v459_v6 = vld [vmem:[%s1934_s23 + $0x60] sm:$0xff]  ;;  %v679_v8 = vld [vmem:[#allocation9 + $0x10] sm:$0xff] }
  0x6b   : > { %587 = vmatpush.msra.mxu1 %v483_v24  ;;  %703 = vmatpush.msra.mxu2 %v689_v56  ;;  %v2066_v7 = vld [vmem:[%s1942_s20 + $0x60] sm:$0xff]  ;;  %v678_v9 = vld [vmem:[#allocation9 + $0x8] sm:$0xff]  ;;  %v461_v13 = vld [vmem:[%s1934_s23 + $0x70] sm:$0xff] }
  0x6c   : > { %523 = vmatpush.msra.mxu0 %v498_v25  ;;  %v677_v10 = vld [vmem:[#allocation9] sm:$0xff]  ;;  %v460_v11 = vld [vmem:[%s1934_s23 + $0x68] sm:$0xff]  ;;  %v477_v14 = vld [vmem:[%s1942_s20 + $0x70] sm:$0xff] }
  0x6d   : > { %588 = vmatpush.msra.mxu1 %v482_v26  ;;  %704 = vmatpush.msra.mxu2 %v688_v57  ;;  %v2071_v12 = vld [vmem:[%s1942_s20 + $0x68] sm:$0xff]  ;;  %v1470_v16 = vld [vmem:[#allocation2] ss:$0 sm:$0xff] }
  0x6e   : > { %524 = vmatpush.msra.mxu0 %v497_v27  ;;  %v462_v17 = vld [vmem:[%s1934_s23 + $0x78] sm:$0xff]  ;;  %697 = vperm.xlu0 %1468, %v1470_v16  }
  0x6f   : > { %589 = vmatpush.msra.mxu1 %v481_v28  ;;  %705 = vmatpush.msra.mxu2 %v687_v58  ;;  %v478_v18 = vld [vmem:[%s1942_s20 + $0x78] sm:$0xff] }
  0x70   : > { %525 = vmatpush.msra.mxu0 %v496_v29  ;;  %v2081_v19 = vld [vmem:[%s2279_s4] ss:$0 sm:$0xff] }
  0x71   : > { %590 = vmatpush.msra.mxu1 %v480_v30  ;;  %706 = vmatpush.msra.mxu2 %v686_v61 }
  0x72   : > { %526 = vmatpush.msra.mxu0 %v495_v31 }
  0x73   : > { %591 = vmatpush.msra.mxu1 %v479_v32  ;;  %527 = vmatmul.f32.vlgmr.msra.gmra.mxu0 %v447_v33 }
  0x74   : > { %592 = vmatmul.f32.vlgmr.msra.gmra.mxu1 %v2006_v34  ;;  %707 = vmatpush.msra.mxu2 %v685_v62 }
  0x76   : > { %708 = vmatpush.msra.mxu2 %v684_v63 }
  0x78   : > { %709 = vmatpush.msra.mxu2 %v683_v0 }
  0x7a   : > { %710 = vmatpush.msra.mxu2 %v682_v3 }
  0x7b   : > { %530 = vmatmul.f32.gmra.mxu0 %v448_v35 }
  0x7c   : > { %595 = vmatmul.f32.gmra.mxu1 %v2011_v36  ;;  %711 = vmatpush.msra.mxu2 %v681_v4 }
  0x7e   : > { %712 = vmatpush.msra.mxu2 %v680_v5 }
  0x80   : > { %713 = vmatpush.msra.mxu2 %v679_v8 }
  0x82   : > { %714 = vmatpush.msra.mxu2 %v678_v9 }
  0x83   : > { %533 = vmatmul.f32.gmra.mxu0 %v449_v37 }
  0x84   : > { %598 = vmatmul.f32.gmra.mxu1 %v2016_v38  ;;  %715 = vmatpush.msra.mxu2 %v677_v10 }
  0x8b   : > { %536 = vmatmul.f32.gmra.mxu0 %v450_v39 }
  0x8c   : > { %601 = vmatmul.f32.gmra.mxu1 %v2021_v40 }
  0x93   : > { %539 = vmatmul.f32.gmra.mxu0 %v451_v41 }
  0x94   : > { %604 = vmatmul.f32.gmra.mxu1 %v2026_v42 }
  0x9b   : > { %542 = vmatmul.f32.gmra.mxu0 %v452_v43 }
  0x9c   : > { %607 = vmatmul.f32.gmra.mxu1 %v2031_v44 }
  0xa3   : > { %545 = vmatmul.f32.gmra.mxu0 %v453_v45 }
  0xa4   : > { %610 = vmatmul.f32.gmra.mxu1 %v2036_v46 }
  0xab   : > { %548 = vmatmul.f32.gmra.mxu0 %v454_v47 }
  0xac   : > { %613 = vmatmul.f32.gmra.mxu1 %v2041_v48 }
  0xb3   : > { %551 = vmatmul.f32.gmra.mxu0 %v455_v49 }
  0xb4   : > { %616 = vmatmul.f32.gmra.mxu1 %v2046_v50 }
  0xbb   : > { %554 = vmatmul.f32.gmra.mxu0 %v456_v53 }
  0xbc   : > { %619 = vmatmul.f32.gmra.mxu1 %v2051_v54 }
  0xc3   : > { %557 = vmatmul.f32.gmra.mxu0 %v457_v59 }
  0xc4   : > { %622 = vmatmul.f32.gmra.mxu1 %v2056_v60 }
  0xcb   : > { %560 = vmatmul.f32.gmra.mxu0 %v458_v1 }
  0xcc   : > { %625 = vmatmul.f32.gmra.mxu1 %v2061_v2 }
  0xd3   : > { %563 = vmatmul.f32.gmra.mxu0 %v459_v6 }
  0xd4   : > { %628 = vmatmul.f32.gmra.mxu1 %v2066_v7 }
  0xdb   : > { %566 = vmatmul.f32.gmra.mxu0 %v460_v11 }
  0xdc   : > { %631 = vmatmul.f32.gmra.mxu1 %v2071_v12 }
  0xe3   : > { %569 = vmatmul.f32.gmra.mxu0 %v461_v13 }
  0xe4   : > { %634 = vmatmul.f32.gmra.mxu1 %v477_v14 }
  0xeb   : > { %572 = vmatmul.f32.gmra.mxu0 %v462_v17 }
  0xec   : > { %637 = vmatmul.f32.gmra.mxu1 %v478_v18 }
  0xf0   : > { %v528_v20 = vpop.f32.mrf.mxu0 }
  0xf1   : > { %v593_v21 = vpop.f32.mrf.mxu1 }
  0xf2   : > { %v594_v22 = vadd.f32 %v593_v21, %v528_v20 }
  0xf4   : > { %v645_v23 = vadd.f32 %v2081_v19, %v594_v22 }
  0xf6   : > { %v661_v24 = vmax.f32 %v645_v23, 0.0 }
  0xf8   : > { %716 = vmatmul.f32.vlgmr.msra.gmra.mxu2 %v661_v24  ;;  %v531_v25 = vpop.f32.mrf.mxu0 }
  0xf9   : > { %v596_v26 = vpop.f32.mrf.mxu1 }
  0xfa   : > { %v597_v27 = vadd.f32 %v596_v26, %v531_v25 }
  0xfc   : > { %v646_v28 = vadd.f32 %v2081_v19, %v597_v27 }
  0xfe   : > { %v662_v29 = vmax.f32 %v646_v28, 0.0 }
 0x100   : > { %719 = vmatmul.f32.gmra.mxu2 %v662_v29  ;;  %v534_v30 = vpop.f32.mrf.mxu0 }
 0x101   : > { %v599_v31 = vpop.f32.mrf.mxu1 }
 0x102   : > { %v600_v32 = vadd.f32 %v599_v31, %v534_v30 }
 0x104   : > { %v647_v33 = vadd.f32 %v2081_v19, %v600_v32 }
 0x106   : > { %v663_v35 = vmax.f32 %v647_v33, 0.0 }
 0x108   : > { %722 = vmatmul.f32.gmra.mxu2 %v663_v35  ;;  %v537_v37 = vpop.f32.mrf.mxu0 }
 0x109   : > { %v602_v39 = vpop.f32.mrf.mxu1 }
 0x10a   : > { %v603_v41 = vadd.f32 %v602_v39, %v537_v37 }
 0x10c   : > { %v648_v43 = vadd.f32 %v2081_v19, %v603_v41 }
 0x10e   : > { %v664_v45 = vmax.f32 %v648_v43, 0.0 }
 0x110   : > { %725 = vmatmul.f32.gmra.mxu2 %v664_v45  ;;  %v540_v47 = vpop.f32.mrf.mxu0 }
 0x111   : > { %v605_v49 = vpop.f32.mrf.mxu1 }
 0x112   : > { %v606_v51 = vadd.f32 %v605_v49, %v540_v47  ;;  %v1116_v47 = vld [vmem:[%s2281_s6 + $0x78] sm:$0xff] }
 0x113   : > { %1117 = vmatpush.msra.mxu3 %v1116_v47 }
 0x114   : > { %v649_v52 = vadd.f32 %v2081_v19, %v606_v51  ;;  %v1115_v51 = vld [vmem:[%s2281_s6 + $0x70] sm:$0xff] }
 0x115   : > { %1118 = vmatpush.msra.mxu3 %v1115_v51 }
 0x116   : > { %v665_v53 = vmax.f32 %v649_v52, 0.0  ;;  %v1114_v52 = vld [vmem:[%s2281_s6 + $0x68] sm:$0xff] }
 0x117   : > { %1119 = vmatpush.msra.mxu3 %v1114_v52 }
 0x118   : > { %728 = vmatmul.f32.gmra.mxu2 %v665_v53  ;;  %v543_v55 = vpop.f32.mrf.mxu0 }
 0x119   : > { %v608_v56 = vpop.f32.mrf.mxu1 }
 0x11a   : > { %v609_v57 = vadd.f32 %v608_v56, %v543_v55 }
 0x11c   : > { %v650_v58 = vadd.f32 %v2081_v19, %v609_v57  ;;  %v1113_v57 = vld [vmem:[%s2281_s6 + $0x60] sm:$0xff] }
 0x11d   : > { %1120 = vmatpush.msra.mxu3 %v1113_v57 }
 0x11e   : > { %v666_v59 = vmax.f32 %v650_v58, 0.0 }
 0x120   : > { %731 = vmatmul.f32.gmra.mxu2 %v666_v59  ;;  %v546_v61 = vpop.f32.mrf.mxu0  ;;  %v1112_v59 = vld [vmem:[%s2281_s6 + $0x58] sm:$0xff] }
 0x121   : > { %v611_v62 = vpop.f32.mrf.mxu1  ;;  %1121 = vmatpush.msra.mxu3 %v1112_v59 }
 0x122   : > { %v612_v63 = vadd.f32 %v611_v62, %v546_v61  ;;  %v1111_v62 = vld [vmem:[%s2281_s6 + $0x50] sm:$0xff] }
 0x123   : > { %1122 = vmatpush.msra.mxu3 %v1111_v62 }
 0x124   : > { %v651_v0 = vadd.f32 %v2081_v19, %v612_v63  ;;  %v1110_v63 = vld [vmem:[%s2281_s6 + $0x48] sm:$0xff] }
 0x125   : > { %1123 = vmatpush.msra.mxu3 %v1110_v63 }
 0x126   : > { %v667_v1 = vmax.f32 %v651_v0, 0.0 }
 0x128   : > { %734 = vmatmul.f32.gmra.mxu2 %v667_v1  ;;  %v549_v3 = vpop.f32.mrf.mxu0 }
 0x129   : > { %v614_v4 = vpop.f32.mrf.mxu1 }
 0x12a   : > { %v615_v5 = vadd.f32 %v614_v4, %v549_v3  ;;  %v1109_v4 = vld [vmem:[%s2281_s6 + $0x40] sm:$0xff] }
 0x12b   : > { %1124 = vmatpush.msra.mxu3 %v1109_v4 }
 0x12c   : > { %v652_v6 = vadd.f32 %v2081_v19, %v615_v5 }
 0x12e   : > { %v668_v8 = vmax.f32 %v652_v6, 0.0  ;;  %v1108_v6 = vld [vmem:[%s2281_s6 + $0x38] sm:$0xff] }
 0x12f   : > { %1125 = vmatpush.msra.mxu3 %v1108_v6 }
 0x130   : > { %737 = vmatmul.f32.gmra.mxu2 %v668_v8  ;;  %v552_v9 = vpop.f32.mrf.mxu0 }
 0x131   : > { %v617_v10 = vpop.f32.mrf.mxu1 }
 0x132   : > { %v618_v11 = vadd.f32 %v617_v10, %v552_v9  ;;  %v1107_v9 = vld [vmem:[%s2281_s6 + $0x30] sm:$0xff]  ;;  %v1106_v10 = vld [vmem:[%s2281_s6 + $0x28] sm:$0xff] }
 0x133   : > { %1126 = vmatpush.msra.mxu3 %v1107_v9 }
 0x134   : > { %v653_v13 = vadd.f32 %v2081_v19, %v618_v11  ;;  %v1104_v11 = vld [vmem:[%s2281_s6 + $0x18] sm:$0xff] }
 0x135   : > { %1127 = vmatpush.msra.mxu3 %v1106_v10 }
 0x136   : > { %v669_v14 = vmax.f32 %v653_v13, 0.0  ;;  %v1103_v13 = vld [vmem:[%s2281_s6 + $0x10] sm:$0xff] }
 0x138   : > { %740 = vmatmul.f32.gmra.mxu2 %v669_v14  ;;  %v555_v15 = vpop.f32.mrf.mxu0  ;;  %v1102_v14 = vld [vmem:[%s2281_s6 + $0x8] sm:$0xff] }
 0x139   : > { %v620_v16 = vpop.f32.mrf.mxu1 }
 0x13a   : > { %v621_v17 = vadd.f32 %v620_v16, %v555_v15  ;;  %v2144_v15 = vpop.permute.xlu0 %697  ;;  %v1101_v16 = vld [vmem:[%s2281_s6] sm:$0xff] }
 0x13c   : > { %v654_v18 = vadd.f32 %v2081_v19, %v621_v17 }
 0x13e   : > { %v670_v20 = vmax.f32 %v654_v18, 0.0 }
 0x140   : > { %743 = vmatmul.f32.gmra.mxu2 %v670_v20  ;;  %v558_v21 = vpop.f32.mrf.mxu0 }
 0x141   : > { %v623_v22 = vpop.f32.mrf.mxu1 }
 0x142   : > { %v624_v23 = vadd.f32 %v623_v22, %v558_v21 }
 0x144   : > { %v655_v24 = vadd.f32 %v2081_v19, %v624_v23 }
 0x146   : > { %v671_v25 = vmax.f32 %v655_v24, 0.0 }
 0x148   : > { %746 = vmatmul.f32.gmra.mxu2 %v671_v25  ;;  %v561_v26 = vpop.f32.mrf.mxu0 }
 0x149   : > { %v626_v27 = vpop.f32.mrf.mxu1 }
 0x14a   : > { %v627_v28 = vadd.f32 %v626_v27, %v561_v26 }
 0x14c   : > { %v656_v29 = vadd.f32 %v2081_v19, %v627_v28 }
 0x14e   : > { %v672_v30 = vmax.f32 %v656_v29, 0.0 }
 0x150   : > { %749 = vmatmul.f32.gmra.mxu2 %v672_v30  ;;  %v564_v31 = vpop.f32.mrf.mxu0 }
 0x151   : > { %v629_v32 = vpop.f32.mrf.mxu1 }
 0x152   : > { %v630_v33 = vadd.f32 %v629_v32, %v564_v31 }
 0x154   : > { %v657_v35 = vadd.f32 %v2081_v19, %v630_v33 }
 0x156   : > { %v673_v37 = vmax.f32 %v657_v35, 0.0 }
 0x158   : > { %752 = vmatmul.f32.gmra.mxu2 %v673_v37  ;;  %v567_v39 = vpop.f32.mrf.mxu0 }
 0x159   : > { %v632_v41 = vpop.f32.mrf.mxu1 }
 0x15a   : > { %v633_v43 = vadd.f32 %v632_v41, %v567_v39 }
 0x15c   : > { %v658_v45 = vadd.f32 %v2081_v19, %v633_v43 }
 0x15e   : > { %v674_v49 = vmax.f32 %v658_v45, 0.0 }
 0x160   : > { %755 = vmatmul.f32.gmra.mxu2 %v674_v49  ;;  %v570_v53 = vpop.f32.mrf.mxu0 }
 0x161   : > { %v635_v55 = vpop.f32.mrf.mxu1 }
 0x162   : > { %v636_v56 = vadd.f32 %v635_v55, %v570_v53 }
 0x164   : > { %v659_v58 = vadd.f32 %v2081_v19, %v636_v56 }
 0x166   : > { %v675_v61 = vmax.f32 %v659_v58, 0.0 }
 0x168   : > { %758 = vmatmul.f32.gmra.mxu2 %v675_v61  ;;  %v573_v0 = vpop.f32.mrf.mxu0 }
 0x169   : > { %v638_v1 = vpop.f32.mrf.mxu1 }
 0x16a   : > { %v639_v3 = vadd.f32 %v638_v1, %v573_v0 }
 0x16c   : > { %v660_v5 = vadd.f32 %v2081_v19, %v639_v3  ;;  %v1105_v19 = vld [vmem:[%s2281_s6 + $0x20] sm:$0xff] }
 0x16d   : > { %1128 = vmatpush.msra.mxu3 %v1105_v19 }
 0x16e   : > { %v676_v8 = vmax.f32 %v660_v5, 0.0 }
 0x16f   : > { %1129 = vmatpush.msra.mxu3 %v1104_v11 }
 0x170   : > { %761 = vmatmul.f32.gmra.mxu2 %v676_v8 }
 0x171   : > { %1130 = vmatpush.msra.mxu3 %v1103_v13 }
 0x173   : > { %1131 = vmatpush.msra.mxu3 %v1102_v14 }
 0x175   : > { %1132 = vmatpush.msra.mxu3 %v1101_v16 }
 0x17b   : > { %v717_v17 = vpop.f32.mrf.mxu2 }
 0x17c   : > { %v718_v18 = vadd.f32 %v717_v17, %v2144_v15 }
 0x17e   : > { %v765_v20 = vsub.f32 0.0, %v718_v18 }
 0x180   : > { %v781_v21 = vmul.f32 1.442695, %v765_v20 }
 0x182   : > { %1471 = vpow2.f32 %v781_v21 }
 0x183   : > { %v720_v22 = vpop.f32.mrf.mxu2 }
 0x184   : > { %v721_v23 = vadd.f32 %v720_v22, %v2144_v15 }
 0x186   : > { %v766_v24 = vsub.f32 0.0, %v721_v23 }
 0x188   : > { %v1472_v25 = vpop.eup %1471  ;;  %v783_v26 = vmul.f32 1.442695, %v766_v24 }
 0x189   : > { %v813_v27 = vadd.f32 1.0, %v1472_v25 }
 0x18a   : > { %1473 = vpow2.f32 %v783_v26 }
 0x18b   : > { %1475 = vrcp.f32 %v813_v27  ;;  %v723_v28 = vpop.f32.mrf.mxu2  ;;  %v840_v45 = vand.u32 2147483648, %v813_v27  ;;  %v838_v51 = vand.u32 2147483647, %v813_v27  ;;  %vm834_vm1 = vweird.f32 %v813_v27 }
 0x18c   : > { %v724_v29 = vadd.f32 %v723_v28, %v2144_v15 }
 0x18d   : > { %v841_v58 = vor.u32 1.1754944e-38, %v840_v45  ;;  %vm839_vm3 = vcmp.eq.f32.partialorder %v838_v51, 8.507059e+37 }
 0x18e   : > { %v767_v30 = vsub.f32 0.0, %v724_v29 }
 0x190   : > { %v1474_v31 = vpop.eup %1473  ;;  %v785_v32 = vmul.f32 1.442695, %v767_v30 }
 0x191   : > { %v1476_v33 = vpop.eup %1475  ;;  %v814_v35 = vadd.f32 1.0, %v1474_v31 }
 0x192   : > { %1477 = vpow2.f32 %v785_v32  ;;  %v830_v37 = vmul.f32 %v1476_v33, %v813_v27  ;;  %vm835_vm0 = vweird.f32 %v1476_v33 }
 0x193   : > { %1479 = vrcp.f32 %v814_v35  ;;  %v726_v39 = vpop.f32.mrf.mxu2  ;;  %vm836_vm2 = vmor %vm834_vm1, %vm835_vm0  ;;  %v855_v4 = vand.u32 2147483648, %v814_v35  ;;  %v853_v8 = vand.u32 2147483647, %v814_v35  ;;  %vm849_vm5 = vweird.f32 %v814_v35 }
 0x194   : > { %v727_v41 = vadd.f32 %v726_v39, %v2144_v15  ;;  %v831_v43 = vsub.f32 1.0, %v830_v37 }
 0x195   : > { %vm854_vm7 = vcmp.eq.f32.partialorder %v853_v8, 8.507059e+37 }
 0x196   : > { %v768_v47 = vsub.f32 0.0, %v727_v41  ;;  %v832_v49 = vmul.f32 %v1476_v33, %v831_v43 }
 0x198   : > { %v1478_v52 = vpop.eup %1477  ;;  %v787_v53 = vmul.f32 1.442695, %v768_v47  ;;  %v833_v55 = vadd.f32 %v1476_v33, %v832_v49 }
 0x199   : > { %v1480_v56 = vpop.eup %1479  ;;  %v815_v57 = vadd.f32 1.0, %v1478_v52 }
 0x19a   : > { %1481 = vpow2.f32 %v787_v53  ;;  %v837_v59 = vsel %vm836_vm2, %v1476_v33, %v833_v55  ;;  %v845_v61 = vmul.f32 %v1480_v56, %v814_v35  ;;  %vm850_vm4 = vweird.f32 %v1480_v56 }
 0x19b   : > { %1483 = vrcp.f32 %v815_v57  ;;  %v729_v62 = vpop.f32.mrf.mxu2  ;;  %v842_v63 = vsel %vm839_vm3, %v841_v58, %v837_v59  ;;  %vm851_vm6 = vmor %vm849_vm5, %vm850_vm4  ;;  %v870_v23 = vand.u32 2147483648, %v815_v57  ;;  %v868_v26 = vand.u32 2147483647, %v815_v57 }
 0x19c   : > { %v730_v0 = vadd.f32 %v729_v62, %v2144_v15  ;;  %v1069_v1 = vmul.f32 %v842_v63, %v2006_v34  ;;  %1133 = vmatmul.f32.vlgmr.msra.gmra.mxu3 %v842_v63  ;;  %v846_v3 = vsub.f32 1.0, %v845_v61  ;;  %v856_v34 = vor.u32 1.1754944e-38, %v855_v4 }
 0x19d   : > { %vm864_vm9 = vweird.f32 %v815_v57  ;;  %v871_v32 = vor.u32 1.1754944e-38, %v870_v23  ;;  %vm869_vm11 = vcmp.eq.f32.partialorder %v868_v26, 8.507059e+37 }
 0x19e   : > { %v769_v5 = vsub.f32 0.0, %v730_v0  ;;  %1085 = vst [vmem:[%s2156_s18] sm:$0xff] %v1069_v1  ;;  %v847_v6 = vmul.f32 %v1480_v56, %v846_v3 }
 0x1a0   : > { %v1482_v9 = vpop.eup %1481  ;;  %v789_v10 = vmul.f32 1.442695, %v769_v5  ;;  %v848_v19 = vadd.f32 %v1480_v56, %v847_v6 }
 0x1a1   : > { %v1484_v11 = vpop.eup %1483  ;;  %v816_v13 = vadd.f32 1.0, %v1482_v9 }
 0x1a2   : > { %1485 = vpow2.f32 %v789_v10  ;;  %v852_v14 = vsel %vm851_vm6, %v1480_v56, %v848_v19  ;;  %v860_v16 = vmul.f32 %v1484_v11, %v815_v57  ;;  %vm865_vm8 = vweird.f32 %v1484_v11 }
 0x1a3   : > { %1487 = vrcp.f32 %v816_v13  ;;  %v732_v17 = vpop.f32.mrf.mxu2  ;;  %v857_v18 = vsel %vm854_vm7, %v856_v34, %v852_v14  ;;  %vm866_vm10 = vmor %vm864_vm9, %vm865_vm8  ;;  %v885_v45 = vand.u32 2147483648, %v816_v13  ;;  %v883_v51 = vand.u32 2147483647, %v816_v13 }
 0x1a4   : > { %v733_v20 = vadd.f32 %v732_v17, %v2144_v15  ;;  %v1070_v21 = vmul.f32 %v857_v18, %v2011_v36  ;;  %1136 = vmatmul.f32.gmra.mxu3 %v857_v18  ;;  %v861_v22 = vsub.f32 1.0, %v860_v16  ;;  %vm879_vm13 = vweird.f32 %v816_v13 }
 0x1a5   : > { %v886_v58 = vor.u32 1.1754944e-38, %v885_v45  ;;  %vm884_vm15 = vcmp.eq.f32.partialorder %v883_v51, 8.507059e+37 }
 0x1a6   : > { %v770_v24 = vsub.f32 0.0, %v733_v20  ;;  %1086 = vst [vmem:[%s2156_s18 + $0x8] sm:$0xff] %v1070_v21  ;;  %v862_v25 = vmul.f32 %v1484_v11, %v861_v22 }
 0x1a8   : > { %v1486_v27 = vpop.eup %1485  ;;  %v791_v28 = vmul.f32 1.442695, %v770_v24  ;;  %v863_v29 = vadd.f32 %v1484_v11, %v862_v25 }
 0x1a9   : > { %v1488_v30 = vpop.eup %1487  ;;  %v817_v31 = vadd.f32 1.0, %v1486_v27 }
 0x1aa   : > { %1489 = vpow2.f32 %v791_v28  ;;  %v867_v33 = vsel %vm866_vm10, %v1484_v11, %v863_v29  ;;  %v875_v36 = vmul.f32 %v1488_v30, %v816_v13  ;;  %vm880_vm12 = vweird.f32 %v1488_v30 }
 0x1ab   : > { %1491 = vrcp.f32 %v817_v31  ;;  %v735_v35 = vpop.f32.mrf.mxu2  ;;  %v872_v37 = vsel %vm869_vm11, %v871_v32, %v867_v33  ;;  %vm881_vm14 = vmor %vm879_vm13, %vm880_vm12  ;;  %v900_v3 = vand.u32 2147483648, %v817_v31  ;;  %v898_v6 = vand.u32 2147483647, %v817_v31 }
 0x1ac   : > { %v736_v39 = vadd.f32 %v735_v35, %v2144_v15  ;;  %v1071_v41 = vmul.f32 %v872_v37, %v2016_v38  ;;  %1139 = vmatmul.f32.gmra.mxu3 %v872_v37  ;;  %v876_v43 = vsub.f32 1.0, %v875_v36  ;;  %vm894_vm1 = vweird.f32 %v817_v31 }
 0x1ad   : > { %v901_v13 = vor.u32 1.1754944e-38, %v900_v3  ;;  %vm899_vm3 = vcmp.eq.f32.partialorder %v898_v6, 8.507059e+37 }
 0x1ae   : > { %v771_v47 = vsub.f32 0.0, %v736_v39  ;;  %1087 = vst [vmem:[%s2156_s18 + $0x10] sm:$0xff] %v1071_v41  ;;  %v877_v49 = vmul.f32 %v1488_v30, %v876_v43 }
 0x1b0   : > { %v1490_v52 = vpop.eup %1489  ;;  %v793_v53 = vmul.f32 1.442695, %v771_v47  ;;  %v878_v55 = vadd.f32 %v1488_v30, %v877_v49 }
 0x1b1   : > { %v1492_v56 = vpop.eup %1491  ;;  %v818_v57 = vadd.f32 1.0, %v1490_v52 }
 0x1b2   : > { %1493 = vpow2.f32 %v793_v53  ;;  %v882_v59 = vsel %vm881_vm14, %v1488_v30, %v878_v55  ;;  %v890_v38 = vmul.f32 %v1492_v56, %v817_v31  ;;  %vm895_vm0 = vweird.f32 %v1492_v56 }
 0x1b3   : > { %1495 = vrcp.f32 %v818_v57  ;;  %v738_v61 = vpop.f32.mrf.mxu2  ;;  %v887_v62 = vsel %vm884_vm15, %v886_v58, %v882_v59  ;;  %vm896_vm2 = vmor %vm894_vm1, %vm895_vm0  ;;  %v915_v21 = vand.u32 2147483648, %v818_v57  ;;  %v913_v24 = vand.u32 2147483647, %v818_v57 }
 0x1b4   : > { %v739_v63 = vadd.f32 %v738_v61, %v2144_v15  ;;  %v1072_v0 = vmul.f32 %v887_v62, %v2021_v40  ;;  %1142 = vmatmul.f32.gmra.mxu3 %v887_v62  ;;  %v891_v1 = vsub.f32 1.0, %v890_v38  ;;  %vm909_vm5 = vweird.f32 %v818_v57 }
 0x1b5   : > { %v916_v30 = vor.u32 1.1754944e-38, %v915_v21  ;;  %vm914_vm7 = vcmp.eq.f32.partialorder %v913_v24, 8.507059e+37 }
 0x1b6   : > { %v772_v4 = vsub.f32 0.0, %v739_v63  ;;  %1088 = vst [vmem:[%s2156_s18 + $0x18] sm:$0xff] %v1072_v0  ;;  %v892_v5 = vmul.f32 %v1492_v56, %v891_v1 }
 0x1b8   : > { %v1494_v8 = vpop.eup %1493  ;;  %v795_v9 = vmul.f32 1.442695, %v772_v4  ;;  %v893_v10 = vadd.f32 %v1492_v56, %v892_v5 }
 0x1b9   : > { %v1496_v19 = vpop.eup %1495  ;;  %v819_v11 = vadd.f32 1.0, %v1494_v8 }
 0x1ba   : > { %1497 = vpow2.f32 %v795_v9  ;;  %v897_v34 = vsel %vm896_vm2, %v1492_v56, %v893_v10  ;;  %v905_v40 = vmul.f32 %v1496_v19, %v818_v57  ;;  %vm910_vm4 = vweird.f32 %v1496_v19 }
 0x1bb   : > { %1499 = vrcp.f32 %v819_v11  ;;  %v741_v14 = vpop.f32.mrf.mxu2  ;;  %v902_v16 = vsel %vm899_vm3, %v901_v13, %v897_v34  ;;  %vm911_vm6 = vmor %vm909_vm5, %vm910_vm4  ;;  %v930_v39 = vand.u32 2147483648, %v819_v11  ;;  %v928_v45 = vand.u32 2147483647, %v819_v11 }
 0x1bc   : > { %v742_v17 = vadd.f32 %v741_v14, %v2144_v15  ;;  %v1073_v18 = vmul.f32 %v902_v16, %v2026_v42  ;;  %1145 = vmatmul.f32.gmra.mxu3 %v902_v16  ;;  %v906_v20 = vsub.f32 1.0, %v905_v40  ;;  %vm924_vm9 = vweird.f32 %v819_v11 }
 0x1bd   : > { %v931_v55 = vor.u32 1.1754944e-38, %v930_v39  ;;  %vm929_vm11 = vcmp.eq.f32.partialorder %v928_v45, 8.507059e+37 }
 0x1be   : > { %v773_v22 = vsub.f32 0.0, %v742_v17  ;;  %1089 = vst [vmem:[%s2156_s18 + $0x20] sm:$0xff] %v1073_v18  ;;  %v907_v23 = vmul.f32 %v1496_v19, %v906_v20 }
 0x1c0   : > { %v1498_v25 = vpop.eup %1497  ;;  %v797_v26 = vmul.f32 1.442695, %v773_v22  ;;  %v908_v27 = vadd.f32 %v1496_v19, %v907_v23 }
 0x1c1   : > { %v1500_v28 = vpop.eup %1499  ;;  %v820_v29 = vadd.f32 1.0, %v1498_v25 }
 0x1c2   : > { %1501 = vpow2.f32 %v797_v26  ;;  %v912_v31 = vsel %vm911_vm6, %v1496_v19, %v908_v27  ;;  %v920_v42 = vmul.f32 %v1500_v28, %v819_v11  ;;  %vm925_vm8 = vweird.f32 %v1500_v28 }
 0x1c3   : > { %1503 = vrcp.f32 %v820_v29  ;;  %v744_v32 = vpop.f32.mrf.mxu2  ;;  %v917_v33 = vsel %vm914_vm7, %v916_v30, %v912_v31  ;;  %vm926_vm10 = vmor %vm924_vm9, %vm925_vm8  ;;  %v945_v62 = vand.u32 2147483648, %v820_v29  ;;  %v943_v1 = vand.u32 2147483647, %v820_v29 }
 0x1c4   : > { %v745_v36 = vadd.f32 %v744_v32, %v2144_v15  ;;  %v1074_v35 = vmul.f32 %v917_v33, %v2031_v44  ;;  %1148 = vmatmul.f32.gmra.mxu3 %v917_v33  ;;  %v921_v37 = vsub.f32 1.0, %v920_v42  ;;  %vm939_vm13 = vweird.f32 %v820_v29 }
 0x1c5   : > { %v946_v9 = vor.u32 1.1754944e-38, %v945_v62  ;;  %vm944_vm15 = vcmp.eq.f32.partialorder %v943_v1, 8.507059e+37 }
 0x1c6   : > { %v774_v41 = vsub.f32 0.0, %v745_v36  ;;  %1090 = vst [vmem:[%s2156_s18 + $0x28] sm:$0xff] %v1074_v35  ;;  %v922_v43 = vmul.f32 %v1500_v28, %v921_v37 }
 0x1c8   : > { %v1502_v47 = vpop.eup %1501  ;;  %v799_v49 = vmul.f32 1.442695, %v774_v41  ;;  %v923_v51 = vadd.f32 %v1500_v28, %v922_v43 }
 0x1c9   : > { %v1504_v52 = vpop.eup %1503  ;;  %v821_v53 = vadd.f32 1.0, %v1502_v47 }
 0x1ca   : > { %1505 = vpow2.f32 %v799_v49  ;;  %v927_v56 = vsel %vm926_vm10, %v1500_v28, %v923_v51  ;;  %v935_v44 = vmul.f32 %v1504_v52, %v820_v29  ;;  %vm940_vm12 = vweird.f32 %v1504_v52 }
 0x1cb   : > { %1507 = vrcp.f32 %v821_v53  ;;  %v747_v57 = vpop.f32.mrf.mxu2  ;;  %v932_v58 = vsel %vm929_vm11, %v931_v55, %v927_v56  ;;  %vm941_vm14 = vmor %vm939_vm13, %vm940_vm12  ;;  %v960_v14 = vand.u32 2147483648, %v821_v53  ;;  %v958_v18 = vand.u32 2147483647, %v821_v53 }
 0x1cc   : > { %v748_v59 = vadd.f32 %v747_v57, %v2144_v15  ;;  %v1075_v38 = vmul.f32 %v932_v58, %v2036_v46  ;;  %1151 = vmatmul.f32.gmra.mxu3 %v932_v58  ;;  %v936_v61 = vsub.f32 1.0, %v935_v44  ;;  %vm954_vm1 = vweird.f32 %v821_v53 }
 0x1cd   : > { %v961_v25 = vor.u32 1.1754944e-38, %v960_v14  ;;  %vm959_vm3 = vcmp.eq.f32.partialorder %v958_v18, 8.507059e+37 }
 0x1ce   : > { %v775_v63 = vsub.f32 0.0, %v748_v59  ;;  %1091 = vst [vmem:[%s2156_s18 + $0x30] sm:$0xff] %v1075_v38  ;;  %v937_v0 = vmul.f32 %v1504_v52, %v936_v61 }
 0x1d0   : > { %v1506_v3 = vpop.eup %1505  ;;  %v801_v4 = vmul.f32 1.442695, %v775_v63  ;;  %v938_v5 = vadd.f32 %v1504_v52, %v937_v0 }
 0x1d1   : > { %v1508_v6 = vpop.eup %1507  ;;  %v822_v8 = vadd.f32 1.0, %v1506_v3 }
 0x1d2   : > { %1509 = vpow2.f32 %v801_v4  ;;  %v942_v10 = vsel %vm941_vm14, %v1504_v52, %v938_v5  ;;  %v950_v46 = vmul.f32 %v1508_v6, %v821_v53  ;;  %vm955_vm0 = vweird.f32 %v1508_v6 }
 0x1d3   : > { %1511 = vrcp.f32 %v822_v8  ;;  %v750_v19 = vpop.f32.mrf.mxu2  ;;  %v947_v11 = vsel %vm944_vm15, %v946_v9, %v942_v10  ;;  %vm956_vm2 = vmor %vm954_vm1, %vm955_vm0  ;;  %v975_v42 = vand.u32 2147483648, %v822_v8  ;;  %v973_v36 = vand.u32 2147483647, %v822_v8 }
 0x1d4   : > { %v751_v13 = vadd.f32 %v750_v19, %v2144_v15  ;;  %v1076_v34 = vmul.f32 %v947_v11, %v2041_v48  ;;  %1154 = vmatmul.f32.gmra.mxu3 %v947_v11  ;;  %v951_v40 = vsub.f32 1.0, %v950_v46  ;;  %vm969_vm5 = vweird.f32 %v822_v8 }
 0x1d5   : > { %v976_v45 = vor.u32 1.1754944e-38, %v975_v42  ;;  %vm974_vm7 = vcmp.eq.f32.partialorder %v973_v36, 8.507059e+37 }
 0x1d6   : > { %v776_v16 = vsub.f32 0.0, %v751_v13  ;;  %1092 = vst [vmem:[%s2156_s18 + $0x38] sm:$0xff] %v1076_v34  ;;  %v952_v17 = vmul.f32 %v1508_v6, %v951_v40 }
 0x1d8   : > { %v1510_v20 = vpop.eup %1509  ;;  %v803_v21 = vmul.f32 1.442695, %v776_v16  ;;  %v953_v22 = vadd.f32 %v1508_v6, %v952_v17 }
 0x1d9   : > { %v1512_v23 = vpop.eup %1511  ;;  %v823_v24 = vadd.f32 1.0, %v1510_v20 }
 0x1da   : > { %1513 = vpow2.f32 %v803_v21  ;;  %v957_v26 = vsel %vm956_vm2, %v1508_v6, %v953_v22  ;;  %v965_v48 = vmul.f32 %v1512_v23, %v822_v8  ;;  %vm970_vm4 = vweird.f32 %v1512_v23 }
 0x1db   : > { %1515 = vrcp.f32 %v823_v24  ;;  %v753_v27 = vpop.f32.mrf.mxu2  ;;  %v962_v28 = vsel %vm959_vm3, %v961_v25, %v957_v26  ;;  %vm971_vm6 = vmor %vm969_vm5, %vm970_vm4  ;;  %v990_v56 = vand.u32 2147483648, %v823_v24  ;;  %v988_v58 = vand.u32 2147483647, %v823_v24 }
 0x1dc   : > { %v754_v29 = vadd.f32 %v753_v27, %v2144_v15  ;;  %v1077_v30 = vmul.f32 %v962_v28, %v2046_v50  ;;  %1157 = vmatmul.f32.gmra.mxu3 %v962_v28  ;;  %v966_v31 = vsub.f32 1.0, %v965_v48  ;;  %vm984_vm9 = vweird.f32 %v823_v24 }
 0x1dd   : > { %v991_v0 = vor.u32 1.1754944e-38, %v990_v56  ;;  %vm989_vm11 = vcmp.eq.f32.partialorder %v988_v58, 8.507059e+37 }
 0x1de   : > { %v777_v32 = vsub.f32 0.0, %v754_v29  ;;  %1093 = vst [vmem:[%s2156_s18 + $0x40] sm:$0xff] %v1077_v30  ;;  %v967_v33 = vmul.f32 %v1512_v23, %v966_v31 }
 0x1e0   : > { %v1514_v35 = vpop.eup %1513  ;;  %v805_v37 = vmul.f32 1.442695, %v777_v32  ;;  %v968_v39 = vadd.f32 %v1512_v23, %v967_v33 }
 0x1e1   : > { %v1516_v41 = vpop.eup %1515  ;;  %v824_v43 = vadd.f32 1.0, %v1514_v35 }
 0x1e2   : > { %1517 = vpow2.f32 %v805_v37  ;;  %v972_v47 = vsel %vm971_vm6, %v1512_v23, %v968_v39  ;;  %v980_v50 = vmul.f32 %v1516_v41, %v823_v24  ;;  %vm985_vm8 = vweird.f32 %v1516_v41 }
 0x1e3   : > { %1519 = vrcp.f32 %v824_v43  ;;  %v756_v49 = vpop.f32.mrf.mxu2  ;;  %v977_v51 = vsel %vm974_vm7, %v976_v45, %v972_v47  ;;  %vm986_vm10 = vmor %vm984_vm9, %vm985_vm8  ;;  %v1005_v9 = vand.u32 2147483648, %v824_v43  ;;  %v1003_v19 = vand.u32 2147483647, %v824_v43 }
 0x1e4   : > { %v757_v52 = vadd.f32 %v756_v49, %v2144_v15  ;;  %v1078_v53 = vmul.f32 %v977_v51, %v2051_v54  ;;  %1160 = vmatmul.f32.gmra.mxu3 %v977_v51  ;;  %v981_v55 = vsub.f32 1.0, %v980_v50  ;;  %vm999_vm13 = vweird.f32 %v824_v43 }
 0x1e5   : > { %v1006_v16 = vor.u32 1.1754944e-38, %v1005_v9  ;;  %vm1004_vm15 = vcmp.eq.f32.partialorder %v1003_v19, 8.507059e+37  ;;  %v1536_v9 = vld [vmem:[%s1942_s20 + $0x78] sm:$0xff] }
 0x1e6   : > { %v778_v44 = vsub.f32 0.0, %v757_v52  ;;  %1094 = vst [vmem:[%s2156_s18 + $0x48] sm:$0xff] %v1078_v53  ;;  %v982_v57 = vmul.f32 %v1516_v41, %v981_v55 }
 0x1e8   : > { %v1518_v59 = vpop.eup %1517  ;;  %v807_v38 = vmul.f32 1.442695, %v778_v44  ;;  %v983_v61 = vadd.f32 %v1516_v41, %v982_v57 }
 0x1e9   : > { %v1520_v62 = vpop.eup %1519  ;;  %v825_v63 = vadd.f32 1.0, %v1518_v59 }
 0x1ea   : > { %1521 = vpow2.f32 %v807_v38  ;;  %v987_v1 = vsel %vm986_vm10, %v1516_v41, %v983_v61  ;;  %v995_v54 = vmul.f32 %v1520_v62, %v824_v43  ;;  %vm1000_vm12 = vweird.f32 %v1520_v62 }
 0x1eb   : > { %1523 = vrcp.f32 %v825_v63  ;;  %v759_v3 = vpop.f32.mrf.mxu2  ;;  %v992_v4 = vsel %vm989_vm11, %v991_v0, %v987_v1  ;;  %vm1001_vm14 = vmor %vm999_vm13, %vm1000_vm12  ;;  %v1020_v24 = vand.u32 2147483648, %v825_v63  ;;  %v1018_v48 = vand.u32 2147483647, %v825_v63 }
 0x1ec   : > { %v760_v5 = vadd.f32 %v759_v3, %v2144_v15  ;;  %v1079_v6 = vmul.f32 %v992_v4, %v2056_v60  ;;  %1163 = vmatmul.f32.gmra.mxu3 %v992_v4  ;;  %v996_v8 = vsub.f32 1.0, %v995_v54  ;;  %vm1014_vm1 = vweird.f32 %v825_v63 }
 0x1ed   : > { %v1021_v42 = vor.u32 1.1754944e-38, %v1020_v24  ;;  %vm1019_vm3 = vcmp.eq.f32.partialorder %v1018_v48, 8.507059e+37 }
 0x1ee   : > { %v779_v10 = vsub.f32 0.0, %v760_v5  ;;  %1095 = vst [vmem:[%s2156_s18 + $0x50] sm:$0xff] %v1079_v6  ;;  %v997_v46 = vmul.f32 %v1520_v62, %v996_v8 }
 0x1f0   : > { %v1522_v11 = vpop.eup %1521  ;;  %v809_v13 = vmul.f32 1.442695, %v779_v10  ;;  %v998_v34 = vadd.f32 %v1520_v62, %v997_v46 }
 0x1f1   : > { %v1524_v40 = vpop.eup %1523  ;;  %v826_v14 = vadd.f32 1.0, %v1522_v11 }
 0x1f2   : > { %1525 = vpow2.f32 %v809_v13  ;;  %v1002_v17 = vsel %vm1001_vm14, %v1520_v62, %v998_v34  ;;  %v1010_v60 = vmul.f32 %v1524_v40, %v825_v63  ;;  %vm1015_vm0 = vweird.f32 %v1524_v40 }
 0x1f3   : > { %1527 = vrcp.f32 %v826_v14  ;;  %v762_v18 = vpop.f32.mrf.mxu2  ;;  %v1007_v20 = vsel %vm1004_vm15, %v1006_v16, %v1002_v17  ;;  %vm1016_vm2 = vmor %vm1014_vm1, %vm1015_vm0  ;;  %v1035_v35 = vand.u32 2147483648, %v826_v14  ;;  %v1033_v39 = vand.u32 2147483647, %v826_v14 }
 0x1f4   : > { %v763_v21 = vadd.f32 %v762_v18, %v2144_v15  ;;  %v1080_v22 = vmul.f32 %v1007_v20, %v2061_v2  ;;  %1166 = vmatmul.f32.gmra.mxu3 %v1007_v20  ;;  %v1011_v23 = vsub.f32 1.0, %v1010_v60  ;;  %vm1029_vm5 = vweird.f32 %v826_v14 }
 0x1f5   : > { %v1036_v50 = vor.u32 1.1754944e-38, %v1035_v35  ;;  %vm1034_vm7 = vcmp.eq.f32.partialorder %v1033_v39, 8.507059e+37 }
 0x1f6   : > { %v780_v25 = vsub.f32 0.0, %v763_v21  ;;  %1096 = vst [vmem:[%s2156_s18 + $0x58] sm:$0xff] %v1080_v22  ;;  %v1012_v26 = vmul.f32 %v1524_v40, %v1011_v23 }
 0x1f8   : > { %v1526_v27 = vpop.eup %1525  ;;  %v811_v28 = vmul.f32 1.442695, %v780_v25  ;;  %v1013_v29 = vadd.f32 %v1524_v40, %v1012_v26 }
 0x1f9   : > { %v1528_v30 = vpop.eup %1527  ;;  %v827_v31 = vadd.f32 1.0, %v1526_v27 }
 0x1fa   : > { %1529 = vpow2.f32 %v811_v28  ;;  %v1017_v15 = vsel %vm1016_vm2, %v1524_v40, %v1013_v29  ;;  %v1025_v2 = vmul.f32 %v1528_v30, %v826_v14  ;;  %vm1030_vm4 = vweird.f32 %v1528_v30 }
 0x1fb   : > { %1531 = vrcp.f32 %v827_v31  ;;  %v1022_v32 = vsel %vm1019_vm3, %v1021_v42, %v1017_v15  ;;  %vm1031_vm6 = vmor %vm1029_vm5, %vm1030_vm4  ;;  %v1050_v55 = vand.u32 2147483648, %v827_v31  ;;  %v1048_v44 = vand.u32 2147483647, %v827_v31 }
 0x1fc   : > { %v1081_v33 = vmul.f32 %v1022_v32, %v2066_v7  ;;  %1169 = vmatmul.f32.gmra.mxu3 %v1022_v32  ;;  %v1026_v36 = vsub.f32 1.0, %v1025_v2  ;;  %vm1044_vm9 = vweird.f32 %v827_v31 }
 0x1fd   : > { %v1051_v59 = vor.u32 1.1754944e-38, %v1050_v55  ;;  %vm1049_vm11 = vcmp.eq.f32.partialorder %v1048_v44, 8.507059e+37 }
 0x1fe   : > { %1097 = vst [vmem:[%s2156_s18 + $0x60] sm:$0xff] %v1081_v33  ;;  %v1027_v37 = vmul.f32 %v1528_v30, %v1026_v36 }
 0x200   : > { %v1530_v41 = vpop.eup %1529  ;;  %v1028_v43 = vadd.f32 %v1528_v30, %v1027_v37 }
 0x201   : > { %v1532_v45 = vpop.eup %1531  ;;  %v828_v47 = vadd.f32 1.0, %v1530_v41 }
 0x202   : > { %v1032_v49 = vsel %vm1031_vm6, %v1528_v30, %v1028_v43  ;;  %v1040_v51 = vmul.f32 %v1532_v45, %v827_v31  ;;  %vm1045_vm8 = vweird.f32 %v1532_v45 }
 0x203   : > { %1533 = vrcp.f32 %v828_v47  ;;  %v1037_v7 = vsel %vm1034_vm7, %v1036_v50, %v1032_v49  ;;  %vm1046_vm10 = vmor %vm1044_vm9, %vm1045_vm8  ;;  %v1065_v1 = vand.u32 2147483648, %v828_v47  ;;  %v1063_v3 = vand.u32 2147483647, %v828_v47 }
 0x204   : > { %v1082_v52 = vmul.f32 %v1037_v7, %v2071_v12  ;;  %1172 = vmatmul.f32.gmra.mxu3 %v1037_v7  ;;  %v1041_v53 = vsub.f32 1.0, %v1040_v51  ;;  %v1535_v12 = vld [vmem:[%s1942_s20 + $0x70] sm:$0xff]  ;;  %vm1059_vm13 = vweird.f32 %v828_v47  ;;  %s1673_s20 = scalar_lea.hbm %s1672_s10, 128 }
 0x205   : > { %v1066_v5 = vor.u32 1.1754944e-38, %v1065_v1  ;;  %vm1064_vm15 = vcmp.eq.f32.partialorder %v1063_v3, 8.507059e+37  ;;  %p1674_p4 = scmp.ne.s32.totalorder %s1672_s10, %s1673_s20  ;;  %p1679_p9 = scmp.lt.s32.totalorder %s1677_s30, %s1673_s20 }
 0x206   : > { %1098 = vst [vmem:[%s2156_s18 + $0x68] sm:$0xff] %v1082_v52  ;;  %v1042_v56 = vmul.f32 %v1532_v45, %v1041_v53 }
 0x207   : > { %p1675_p8 = pnand %p1674_p4, %p1869_p3  ;;  %p1680_p11 = por %p1679_p9, %p1678_p10 }
 0x208   : > { %v1043_v57 = vadd.f32 %v1532_v45, %v1042_v56 }
 0x209   : > { %v1534_v58 = vpop.eup %1533  ;;  %p1676_p2 = pneg %p1675_p8 }
 0x20a   : > { %v1047_v38 = vsel %vm1046_vm10, %v1532_v45, %v1043_v57  ;;  %v1055_v61 = vmul.f32 %v1534_v58, %v828_v47  ;;  %vm1060_vm12 = vweird.f32 %v1534_v58 }
 0x20b   : > { %v1052_v62 = vsel %vm1049_vm11, %v1051_v59, %v1047_v38  ;;  %vm1061_vm14 = vmor %vm1059_vm13, %vm1060_vm12  ;;  %p1681_p12 = pnand %p1680_p11, %p1676_p2 }
 0x20c   : > { %v1083_v63 = vmul.f32 %v1535_v12, %v1052_v62  ;;  %1175 = vmatmul.f32.gmra.mxu3 %v1052_v62  ;;  %v1056_v0 = vsub.f32 1.0, %v1055_v61 }
 0x20e   : > { %1099 = vst [vmem:[%s2156_s18 + $0x70] sm:$0xff] %v1083_v63  ;;  %v1057_v54 = vmul.f32 %v1534_v58, %v1056_v0 }
 0x210   : > { %v1058_v4 = vadd.f32 %v1534_v58, %v1057_v54 }
 0x212   : > { %v1062_v6 = vsel %vm1061_vm14, %v1534_v58, %v1058_v4 }
 0x213   : > { %v1067_v8 = vsel %vm1064_vm15, %v1066_v5, %v1062_v6 }
 0x214   : > { %v1084_v10 = vmul.f32 %v1536_v9, %v1067_v8  ;;  %1178 = vmatmul.f32.gmra.mxu3 %v1067_v8 }
 0x216   : > { %1100 = vst [vmem:[%s2156_s18 + $0x78] sm:$0xff] %v1084_v10 }
 0x217   : > { %1684 = shalt.err (!%p1681_p12)
}
 0x218   : > { %s1742_s27 = smov 128   ;;  %s1743_s0 = smov 8   ;;  %vm1182_vm0 = vcmask 31744  }
 0x219   : > { %1403 = dma.vmem_to_hbm [thread:$0]  (%p1869_p3), %s1218_s24, 2048, %s1220_s26, %s1200_s3, %s1742_s27, %s1742_s27, %s1743_s0  }
 0x21a   : > { %s2223_s18 = scalar_lea.vmem %s2284_s9, %s1382_s29 }
 0x21f   : > { %v1134_v46 = vpop.f32.mrf.mxu3 }
 0x220   : > { %1183 = vst.msk [vmem:[%s2223_s18] sm:$0xff] %vm1182_vm0, %v1134_v46 }
 0x227   : > { %v1137_v19 = vpop.f32.mrf.mxu3 }
 0x228   : > { %1184 = vst.msk [vmem:[%s2223_s18 + $0x8] sm:$0xff] %vm1182_vm0, %v1137_v19 }
 0x22f   : > { %v1140_v11 = vpop.f32.mrf.mxu3 }
 0x230   : > { %1185 = vst.msk [vmem:[%s2223_s18 + $0x10] sm:$0xff] %vm1182_vm0, %v1140_v11 }
 0x237   : > { %v1143_v13 = vpop.f32.mrf.mxu3 }
 0x238   : > { %1186 = vst.msk [vmem:[%s2223_s18 + $0x18] sm:$0xff] %vm1182_vm0, %v1143_v13 }
 0x23f   : > { %v1146_v34 = vpop.f32.mrf.mxu3 }
 0x240   : > { %1187 = vst.msk [vmem:[%s2223_s18 + $0x20] sm:$0xff] %vm1182_vm0, %v1146_v34 }
 0x247   : > { %v1149_v40 = vpop.f32.mrf.mxu3 }
 0x248   : > { %1188 = vst.msk [vmem:[%s2223_s18 + $0x28] sm:$0xff] %vm1182_vm0, %v1149_v40 }
 0x24f   : > { %v1152_v14 = vpop.f32.mrf.mxu3 }
 0x250   : > { %1189 = vst.msk [vmem:[%s2223_s18 + $0x30] sm:$0xff] %vm1182_vm0, %v1152_v14 }
 0x257   : > { %v1155_v16 = vpop.f32.mrf.mxu3 }
 0x258   : > { %1190 = vst.msk [vmem:[%s2223_s18 + $0x38] sm:$0xff] %vm1182_vm0, %v1155_v16 }
 0x25f   : > { %v1158_v17 = vpop.f32.mrf.mxu3 }
 0x260   : > { %1191 = vst.msk [vmem:[%s2223_s18 + $0x40] sm:$0xff] %vm1182_vm0, %v1158_v17 }
 0x267   : > { %v1161_v60 = vpop.f32.mrf.mxu3 }
 0x268   : > { %1192 = vst.msk [vmem:[%s2223_s18 + $0x48] sm:$0xff] %vm1182_vm0, %v1161_v60 }
 0x26f   : > { %v1164_v18 = vpop.f32.mrf.mxu3 }
 0x270   : > { %1193 = vst.msk [vmem:[%s2223_s18 + $0x50] sm:$0xff] %vm1182_vm0, %v1164_v18 }
 0x277   : > { %v1167_v20 = vpop.f32.mrf.mxu3 }
 0x278   : > { %1194 = vst.msk [vmem:[%s2223_s18 + $0x58] sm:$0xff] %vm1182_vm0, %v1167_v20 }
 0x27f   : > { %v1170_v21 = vpop.f32.mrf.mxu3 }
 0x280   : > { %1195 = vst.msk [vmem:[%s2223_s18 + $0x60] sm:$0xff] %vm1182_vm0, %v1170_v21 }
 0x287   : > { %v1173_v22 = vpop.f32.mrf.mxu3 }
 0x288   : > { %1196 = vst.msk [vmem:[%s2223_s18 + $0x68] sm:$0xff] %vm1182_vm0, %v1173_v22 }
 0x28f   : > { %v1176_v23 = vpop.f32.mrf.mxu3 }
 0x290   : > { %1197 = vst.msk [vmem:[%s2223_s18 + $0x70] sm:$0xff] %vm1182_vm0, %v1176_v23 }
 0x297   : > { %v1179_v24 = vpop.f32.mrf.mxu3 }
 0x298   : > { %1198 = vst.msk [vmem:[%s2223_s18 + $0x78] sm:$0xff] %vm1182_vm0, %v1179_v24 }
 0x299 PF: > { %s1238_s17 = sand.u32 1, %s1723_s11   ;;  %p2311_p3 = scmp.ge.s32.totalorder %s1735_s14, 2 }
 0x29a   : > { %s1239_s5 = scalar_lea.sflag [#allocation5], %s1238_s17 }
 0x29b   : > { %p1420_p13 = pnand %p2311_p3, %p1832_p6 }
 0x29d   : > { %p1421_p0 = pneg %p1420_p13 }
 0x29f   : > { %1718 = dma.done.wait (%p1421_p0), %s1239_s5, 2048  }
 0x2a0   : > { %1720 = vsyncadd (%p1421_p0), %s1239_s5, 4294965248  ;;  %s2312_s14 = sld [smem:[#allocation19_spill]]  ;;  %s2315_s11 = smov %s1727_s12 }
 0x2a1   : > { %s2313_s23 = sld [smem:[#allocation17_spill]] }
 0x2a2   : > { %s2314_s13 = sld [smem:[#allocation20_spill]] }
 0x2a6   : > { %p29_p5 = scmp.ge.s32.totalorder %s2312_s14, 4  }
 0x2a7   : > { %s2316_s12 = smov %s2313_s23 }
 0x2a8   :  { %31 = sbr.rel (!%p29_p5) target bundleno = 12 (0xc), region = 130 }
 0x2ad   :  { %1253 = vsyncpa [#allocation4], 1 }
 0x2ae   :  { %1255 = vsyncpa [#allocation4 + $0x1], 1 }
 0x2af   :  { %1256 = vsyncpa [#allocation7], 1 }
 0x2b0   :  { %1258 = vsyncpa [#allocation7 + $0x1], 1 }
 0x2b1   :  { %1259 = vsyncpa [#allocation10], 1 }
 0x2b2   :  { %1260 = vsyncpa [#allocation5], 1 }
 0x2b3   :  { %1262 = vsyncpa [#allocation5 + $0x1], 1 }

</bundles_post_ra>
